<compile_context>
chip_gen: v6e
topology: v6e:2x2x1
jax: 0.10.0
libtpu: 0.0.40
codegen_flags: <defaults>
</compile_context>

<pallas_src>
import functools
import math

import jax
import jax.numpy as jnp
from jax.experimental import pallas as pl
from jax.experimental.pallas import tpu as pltpu


CFG = dict(vocab=100, hidden=32, layers=2, heads=2, intermediate=64,
           max_pos=16, type_vocab=2, num_classes=3, eps=1e-12)

LOGIT_PAD = 128   # lane-dense classifier output width; sliced to num_classes in glue
VEC_PAD = 128     # lane width of the packed 1-row parameter table

# Row layout of the packed (rows, 128) parameter table.
ROW_EMB_G, ROW_EMB_B, ROW_POOL_B, ROW_CLS_B = 0, 1, 2, 3
ROW_LAYER0 = 4
ROWS_PER_LAYER = 8
OFF_BQKV, OFF_BO, OFF_LN1G, OFF_LN1B, OFF_BI, OFF_BO2, OFF_LN2G, OFF_LN2B = range(8)


# ------------------------------ fused kernel --------------------------------

def _layernorm(h, g, b, eps):
    mu = jnp.mean(h, axis=-1, keepdims=True)
    var = jnp.mean(jnp.square(h - mu), axis=-1, keepdims=True)
    return (h - mu) * jax.lax.rsqrt(var + eps) * g + b


def _bert_fused_kernel(
    emb_ref, mask_ref, vecs_ref,
    wqkv_ref, wo_ref, wi_ref, wo2_ref, poolw_ref, clsw_ref,
    out_ref,
    *, n_layers, n_heads, head_dim, hidden, inter, eps,
):
    H = hidden
    scale = 1.0 / math.sqrt(head_dim)

    def vec(row, width):
        # Static sublane slice of the packed (rows, 128) f32 parameter table.
        return vecs_ref[row:row + 1, 0:width]                            # (1, width)

    # Embedding LayerNorm (word + position + token-type sum is computed in glue).
    x = _layernorm(emb_ref[0], vec(ROW_EMB_G, H), vec(ROW_EMB_B, H), eps)   # (GS, H) f32
    bias = mask_ref[0]                                                      # (GS, GS) additive
    rows = x.shape[0]

    for l in range(n_layers):                                   # unrolled (static, L=2)
        base = ROW_LAYER0 + ROWS_PER_LAYER * l

        # ---- fused QKV projection: one (GS,H) @ (H,3H) bf16 matmul, f32 accumulate ----
        qkv = jnp.dot(x.astype(jnp.bfloat16), wqkv_ref[l],
                      preferred_element_type=jnp.float32) + vec(base + OFF_BQKV, 3 * H)

        # one K transpose per layer (hoisted out of the head loop)
        kT = jnp.transpose(qkv[:, H:2 * H]).astype(jnp.bfloat16)            # (H, GS)
        qkv_bf = qkv.astype(jnp.bfloat16)
        wo_l = wo_ref[l]                                                     # (H, H) bf16

        # ---- per-head attention; context folded straight into the output proj ----
        attn = jnp.zeros((rows, H), jnp.float32)
        for h in range(n_heads):                                # unrolled (static, nh=2)
            lo, hi = h * head_dim, (h + 1) * head_dim
            q = qkv_bf[:, lo:hi]                                             # (GS, dh)
            v = qkv_bf[:, 2 * H + lo:2 * H + hi]                             # (GS, dh)
            s = jnp.dot(q, kT[lo:hi, :],
                        preferred_element_type=jnp.float32) * scale + bias   # (GS, GS)
            m = jnp.max(s, axis=-1, keepdims=True)
            p = jnp.exp(s - m)
            p = p * pl.reciprocal(jnp.sum(p, axis=-1, keepdims=True), approx=True)
            ctx = jnp.dot(p.astype(jnp.bfloat16), v,
                          preferred_element_type=jnp.float32)                # (GS, dh)
            attn = attn + jnp.dot(ctx.astype(jnp.bfloat16), wo_l[lo:hi, :],
                                  preferred_element_type=jnp.float32)        # (GS, H)

        attn = attn + vec(base + OFF_BO, H)
        x = _layernorm(attn + x, vec(base + OFF_LN1G, H), vec(base + OFF_LN1B, H), eps)

        # ---- feed forward + residual + LayerNorm2 ----
        ff = jnp.dot(x.astype(jnp.bfloat16), wi_ref[l],
                     preferred_element_type=jnp.float32) + vec(base + OFF_BI, inter)
        # TODO(synk): HF BERT uses exact erf GELU; tanh-approx kept for guaranteed lowering.
        ff = jax.nn.gelu(ff, approximate=True)
        ff = jnp.dot(ff.astype(jnp.bfloat16), wo2_ref[l],
                     preferred_element_type=jnp.float32) + vec(base + OFF_BO2, H)
        x = _layernorm(ff + x, vec(base + OFF_LN2G, H), vec(base + OFF_LN2B, H), eps)

    # ---- pooler + classifier for all rows (tiny); CLS rows are picked in glue ----
    pooled = jnp.tanh(jnp.dot(x.astype(jnp.bfloat16), poolw_ref[...],
                              preferred_element_type=jnp.float32) + vec(ROW_POOL_B, H))
    # dropout(rate=0.1) between pooler and classifier is identity at inference time.
    out_ref[0] = jnp.dot(pooled.astype(jnp.bfloat16), clsw_ref[...],
                         preferred_element_type=jnp.float32) + vec(ROW_CLS_B, LOGIT_PAD)


def bert_classifier_fused(emb_blocks, mask_blocks, packed, cfg=CFG):
    """One pallas_call over grid=(n_blocks,): whole encoder + pooler + classifier."""
    n_blocks, GS, H = emb_blocks.shape
    L, I = cfg["layers"], cfg["intermediate"]
    rows_pad = packed["vecs"].shape[0]

    kern = functools.partial(
        _bert_fused_kernel, n_layers=L, n_heads=cfg["heads"],
        head_dim=H // cfg["heads"], hidden=H, inter=I, eps=cfg["eps"])

    in_specs = [
        pl.BlockSpec((1, GS, H), lambda g: (g, 0, 0)),          # folded embeddings
        pl.BlockSpec((1, GS, GS), lambda g: (g, 0, 0)),         # block-diagonal mask bias
        pl.BlockSpec((rows_pad, VEC_PAD), lambda g: (0, 0)),    # packed 1-row params
        pl.BlockSpec((L, H, 3 * H), lambda g: (0, 0, 0)),       # fused QKV weights (bf16)
        pl.BlockSpec((L, H, H), lambda g: (0, 0, 0)),           # attn output proj (bf16)
        pl.BlockSpec((L, H, I), lambda g: (0, 0, 0)),           # FFN in (bf16)
        pl.BlockSpec((L, I, H), lambda g: (0, 0, 0)),           # FFN out (bf16)
        pl.BlockSpec((H, H), lambda g: (0, 0)),                 # pooler weight (bf16)
        pl.BlockSpec((H, LOGIT_PAD), lambda g: (0, 0)),         # classifier weight (bf16, padded)
    ]

    return pl.pallas_call(
        kern,
        out_shape=jax.ShapeDtypeStruct((n_blocks, GS, LOGIT_PAD), jnp.float32),
        grid=(n_blocks,),
        in_specs=in_specs,
        out_specs=pl.BlockSpec((1, GS, LOGIT_PAD), lambda g: (g, 0, 0)),
        compiler_params=pltpu.CompilerParams(dimension_semantics=("parallel",)),
    )(emb_blocks, mask_blocks, packed["vecs"],
      packed["wqkv"], packed["wo"], packed["wi"], packed["wo2"],
      packed["pool_w"], packed["cls_w_pad"])


# ----------------------------- model definition ----------------------------

def init_params(key, cfg):
    H, I, C = cfg["hidden"], cfg["intermediate"], cfg["num_classes"]
    keys = iter(jax.random.split(key, 8 + 16 * cfg["layers"]))

    def nrm(shape):
        return jax.random.normal(next(keys), shape, jnp.float32) * 0.02

    p = {
        "word_emb": nrm((cfg["vocab"], H)),
        "pos_emb": nrm((cfg["max_pos"], H)),
        "type_emb": nrm((cfg["type_vocab"], H)),
        "emb_ln_g": jnp.ones((1, H), jnp.float32),
        "emb_ln_b": jnp.zeros((1, H), jnp.float32),
        "pool_w": nrm((H, H)), "pool_b": jnp.zeros((1, H), jnp.float32),
        "cls_w": nrm((H, C)), "cls_b": jnp.zeros((1, C), jnp.float32),
        "layers": [],
    }
    for _ in range(cfg["layers"]):
        p["layers"].append({
            "wq": nrm((H, H)), "bq": jnp.zeros((1, H), jnp.float32),
            "wk": nrm((H, H)), "bk": jnp.zeros((1, H), jnp.float32),
            "wv": nrm((H, H)), "bv": jnp.zeros((1, H), jnp.float32),
            "wo": nrm((H, H)), "bo": jnp.zeros((1, H), jnp.float32),
            "ln1_g": jnp.ones((1, H), jnp.float32),
            "ln1_b": jnp.zeros((1, H), jnp.float32),
            "wi": nrm((H, I)), "bi": jnp.zeros((1, I), jnp.float32),
            "wo2": nrm((I, H)), "bo2": jnp.zeros((1, H), jnp.float32),
            "ln2_g": jnp.ones((1, H), jnp.float32),
            "ln2_b": jnp.zeros((1, H), jnp.float32),
        })
    return p


def _pad_row(v):
    v = jnp.asarray(v, jnp.float32).reshape(-1)
    return jnp.pad(v, (0, VEC_PAD - v.shape[0]))


def pack_params(params, cfg):
    """Stack per-layer matmul weights (bf16), fuse QKV, pad classifier, and pack
    every 1-row parameter into one lane-dense (rows, 128) f32 table."""
    H, I, C = cfg["hidden"], cfg["intermediate"], cfg["num_classes"]
    layers = params["layers"]
    assert 3 * H <= VEC_PAD and I <= VEC_PAD and C <= VEC_PAD

    rows = [
        _pad_row(params["emb_ln_g"]), _pad_row(params["emb_ln_b"]),
        _pad_row(params["pool_b"]),
        jnp.zeros((VEC_PAD,), jnp.float32).at[:C].set(params["cls_b"].reshape(-1)),
    ]
    for lyr in layers:
        rows += [
            _pad_row(jnp.concatenate([lyr["bq"], lyr["bk"], lyr["bv"]], axis=1)),
            _pad_row(lyr["bo"]),
            _pad_row(lyr["ln1_g"]), _pad_row(lyr["ln1_b"]),
            _pad_row(lyr["bi"]), _pad_row(lyr["bo2"]),
            _pad_row(lyr["ln2_g"]), _pad_row(lyr["ln2_b"]),
        ]
    n_rows = len(rows)
    rows_pad = -(-n_rows // 8) * 8
    rows += [jnp.zeros((VEC_PAD,), jnp.float32)] * (rows_pad - n_rows)
    vecs = jnp.stack(rows)                                              # (rows_pad, 128) f32

    def stack_bf16(name):
        return jnp.stack([lyr[name] for lyr in layers]).astype(jnp.bfloat16)

    cls_w_pad = jnp.zeros((H, LOGIT_PAD), jnp.float32).at[:, :C].set(params["cls_w"])

    return {
        "vecs": vecs,
        "wqkv": jnp.stack([jnp.concatenate([l["wq"], l["wk"], l["wv"]], axis=1)
                           for l in layers]).astype(jnp.bfloat16),      # (L, H, 3H)
        "wo": stack_bf16("wo"),                                         # (L, H, H)
        "wi": stack_bf16("wi"),                                         # (L, H, I)
        "wo2": stack_bf16("wo2"),                                       # (L, I, H)
        "pool_w": params["pool_w"].astype(jnp.bfloat16),                # (H, H)
        "cls_w_pad": cls_w_pad.astype(jnp.bfloat16),                    # (H, 128)
    }


def _pick_n_blocks(batch):
    """Single grid step on v5e/v6e (one TC); two 'parallel' steps on v7x (two TCs)."""
    try:
        kind = jax.devices()[0].device_kind.lower()
    except Exception:
        kind = ""
    if batch % 2 == 0 and ("v7" in kind or "7x" in kind):
        return 2
    return 1


def _build_block_mask(attention_mask, n_blocks, G, S):
    """Block-diagonal additive attention bias for G sequences folded per grid step."""
    key_bias = (1.0 - attention_mask.astype(jnp.float32)) * -1e9       # (B, S)
    key_bias = key_bias.reshape(n_blocks, G, S)
    same_seq = jnp.eye(G, dtype=jnp.float32)[None, :, None, :, None]   # (1, G, 1, G, 1)
    m = jnp.where(same_seq > 0.5,
                  key_bias[:, None, None, :, :],                       # (nb, 1, 1, G, S)
                  jnp.float32(-1e9))
    m = jnp.broadcast_to(m, (n_blocks, G, S, G, S))
    return m.reshape(n_blocks, G * S, G * S)


def sentiment_classifier_forward(params, input_ids, attention_mask, cfg=CFG):
    B, S = input_ids.shape
    H, C = cfg["hidden"], cfg["num_classes"]

    # Embedding gathers (glue): word + position + token-type.
    # TODO(synk): token_type_ids are assumed all-zero (HF default when not provided).
    we = params["word_emb"][input_ids]                # (B, S, H)
    pe = params["pos_emb"][:S][None]                  # (1, S, H)
    te = params["type_emb"][0][None, None]            # (1, 1, H)
    emb = we + pe + te

    n_blocks = _pick_n_blocks(B)
    G = B // n_blocks
    GS = G * S

    emb_blocks = emb.reshape(n_blocks, GS, H)
    mask_blocks = _build_block_mask(attention_mask, n_blocks, G, S)

    packed = pack_params(params, cfg)
    out = bert_classifier_fused(emb_blocks, mask_blocks, packed, cfg)   # (nb, GS, 128)
    return out.reshape(B, S, LOGIT_PAD)[:, 0, :C]                       # (B, num_classes)


# ---------------------------------- main ------------------------------------

if __name__ == "__main__":
    key = jax.random.PRNGKey(0)
    pkey, ikey = jax.random.split(key)

    B, S = 2, 8
    params = init_params(pkey, CFG)

    input_ids = jax.random.randint(ikey, (B, S), 0, CFG["vocab"], dtype=jnp.int32)
    attention_mask = jnp.ones((B, S), dtype=jnp.int32)
    attention_mask = attention_mask.at[1, 6:].set(0)   # pad tail of sample 1

    logits = sentiment_classifier_forward(params, input_ids, attention_mask)
    logits = jax.block_until_ready(logits)

    assert logits.shape == (B, CFG["num_classes"])
    assert bool(jnp.all(jnp.isfinite(logits)))
    print("KERNEL_OK")
</pallas_src>

<mosaic_0001>
module attributes {stable_mosaic.version = 11 : i64} {
  func.func @_bert_fused_kernel(%arg0: i32, %arg1: memref<1x16x32xf32, #tpu.memory_space<vmem>>, %arg2: memref<1x16x16xf32, #tpu.memory_space<vmem>>, %arg3: memref<24x128xf32, #tpu.memory_space<vmem>>, %arg4: memref<2x32x96xbf16, #tpu.memory_space<vmem>>, %arg5: memref<2x32x32xbf16, #tpu.memory_space<vmem>>, %arg6: memref<2x32x64xbf16, #tpu.memory_space<vmem>>, %arg7: memref<2x64x32xbf16, #tpu.memory_space<vmem>>, %arg8: memref<32x32xbf16, #tpu.memory_space<vmem>>, %arg9: memref<32x128xbf16, #tpu.memory_space<vmem>>, %arg10: memref<1x16x128xf32, #tpu.memory_space<vmem>>) attributes {dimension_semantics = [#tpu.dimension_semantics<parallel>], iteration_bounds = array<i64: 1>, scalar_prefetch = 0 : i64, scratch_operands = 0 : i64, tpu.core_type = #tpu.core_type<tc>, window_params = [{transform_indices = @transform_0, window_bounds = array<i64: 1, 16, 32>}, {transform_indices = @transform_1, window_bounds = array<i64: 1, 16, 16>}, {pipeline_mode = #tpu.pipeline_mode<synchronous>, transform_indices = @transform_2, window_bounds = array<i64: 24, 128>}, {pipeline_mode = #tpu.pipeline_mode<synchronous>, transform_indices = @transform_3, window_bounds = array<i64: 2, 32, 96>}, {pipeline_mode = #tpu.pipeline_mode<synchronous>, transform_indices = @transform_4, window_bounds = array<i64: 2, 32, 32>}, {pipeline_mode = #tpu.pipeline_mode<synchronous>, transform_indices = @transform_5, window_bounds = array<i64: 2, 32, 64>}, {pipeline_mode = #tpu.pipeline_mode<synchronous>, transform_indices = @transform_6, window_bounds = array<i64: 2, 64, 32>}, {pipeline_mode = #tpu.pipeline_mode<synchronous>, transform_indices = @transform_7, window_bounds = array<i64: 32, 32>}, {pipeline_mode = #tpu.pipeline_mode<synchronous>, transform_indices = @transform_8, window_bounds = array<i64: 32, 128>}, {transform_indices = @transform_9, window_bounds = array<i64: 1, 16, 128>}]} {
    %c0 = arith.constant 0 : index
    %c0_0 = arith.constant 0 : index
    %c0_1 = arith.constant 0 : index
    %0 = vector.load %arg1[%c0, %c0_0, %c0_1] : memref<1x16x32xf32, #tpu.memory_space<vmem>>, vector<1x16x32xf32>
    %1 = vector.shape_cast %0 : vector<1x16x32xf32> to vector<16x32xf32>
    %c0_2 = arith.constant 0 : index
    %c0_3 = arith.constant 0 : index
    %2 = vector.load %arg3[%c0_2, %c0_3] : memref<24x128xf32, #tpu.memory_space<vmem>>, vector<1x32xf32>
    %c1 = arith.constant 1 : index
    %c0_4 = arith.constant 0 : index
    %3 = vector.load %arg3[%c1, %c0_4] : memref<24x128xf32, #tpu.memory_space<vmem>>, vector<1x32xf32>
    %cst = arith.constant dense<0.000000e+00> : vector<16xf32>
    %4 = vector.multi_reduction <add>, %1, %cst [1] : vector<16x32xf32> to vector<16xf32>
    %5 = vector.shape_cast %4 : vector<16xf32> to vector<16x1xf32>
    %cst_5 = arith.constant 3.200000e+01 : f32
    %6 = vector.broadcast %cst_5 : f32 to vector<16x1xf32>
    %7 = arith.divf %5, %6 : vector<16x1xf32>
    %8 = vector.broadcast %7 : vector<16x1xf32> to vector<16x32xf32>
    %9 = arith.subf %1, %8 : vector<16x32xf32>
    %10 = arith.mulf %9, %9 : vector<16x32xf32>
    %cst_6 = arith.constant dense<0.000000e+00> : vector<16xf32>
    %11 = vector.multi_reduction <add>, %10, %cst_6 [1] : vector<16x32xf32> to vector<16xf32>
    %12 = vector.shape_cast %11 : vector<16xf32> to vector<16x1xf32>
    %cst_7 = arith.constant 3.200000e+01 : f32
    %13 = vector.broadcast %cst_7 : f32 to vector<16x1xf32>
    %14 = arith.divf %12, %13 : vector<16x1xf32>
    %15 = vector.broadcast %7 : vector<16x1xf32> to vector<16x32xf32>
    %16 = arith.subf %1, %15 : vector<16x32xf32>
    %cst_8 = arith.constant 9.99999996E-13 : f32
    %17 = vector.broadcast %cst_8 : f32 to vector<16x1xf32>
    %18 = arith.addf %14, %17 : vector<16x1xf32>
    %19 = math.rsqrt %18 : vector<16x1xf32>
    %20 = vector.broadcast %19 : vector<16x1xf32> to vector<16x32xf32>
    %21 = arith.mulf %16, %20 : vector<16x32xf32>
    %22 = vector.broadcast %2 : vector<1x32xf32> to vector<16x32xf32>
    %23 = arith.mulf %21, %22 : vector<16x32xf32>
    %24 = vector.broadcast %3 : vector<1x32xf32> to vector<16x32xf32>
    %25 = arith.addf %23, %24 : vector<16x32xf32>
    %c0_9 = arith.constant 0 : index
    %c0_10 = arith.constant 0 : index
    %c0_11 = arith.constant 0 : index
    %26 = vector.load %arg2[%c0_9, %c0_10, %c0_11] : memref<1x16x16xf32, #tpu.memory_space<vmem>>, vector<1x16x16xf32>
    %27 = vector.shape_cast %26 : vector<1x16x16xf32> to vector<16x16xf32>
    %28 = arith.truncf %25 : vector<16x32xf32> to vector<16x32xbf16>
    %c0_12 = arith.constant 0 : index
    %c0_13 = arith.constant 0 : index
    %c0_14 = arith.constant 0 : index
    %29 = vector.load %arg4[%c0_12, %c0_13, %c0_14] : memref<2x32x96xbf16, #tpu.memory_space<vmem>>, vector<1x32x96xbf16>
    %30 = vector.shape_cast %29 : vector<1x32x96xbf16> to vector<32x96xbf16>
    %cst_15 = arith.constant dense<0.000000e+00> : vector<16x96xf32>
    %31 = tpu.matmul %28, %30, %cst_15 {dimension_numbers = #tpu.dot_dimension_numbers<[1], [0], [0], [1], [0, 0, 1, 1], [], []>} : vector<16x32xbf16>, vector<32x96xbf16>, vector<16x96xf32> -> vector<16x96xf32>
    %c4 = arith.constant 4 : index
    %c0_16 = arith.constant 0 : index
    %32 = vector.load %arg3[%c4, %c0_16] : memref<24x128xf32, #tpu.memory_space<vmem>>, vector<1x96xf32>
    %33 = vector.broadcast %32 : vector<1x96xf32> to vector<16x96xf32>
    %34 = arith.addf %31, %33 : vector<16x96xf32>
    %35 = vector.extract_strided_slice %34 {offsets = [0, 32], sizes = [16, 32], strides = [1, 1]} : vector<16x96xf32> to vector<16x32xf32>
    %36 = tpu.transpose %35, [1, 0] : vector<16x32xf32> -> vector<32x16xf32>
    %37 = arith.truncf %36 : vector<32x16xf32> to vector<32x16xbf16>
    %38 = arith.truncf %34 : vector<16x96xf32> to vector<16x96xbf16>
    %c0_17 = arith.constant 0 : index
    %c0_18 = arith.constant 0 : index
    %c0_19 = arith.constant 0 : index
    %39 = vector.load %arg5[%c0_17, %c0_18, %c0_19] : memref<2x32x32xbf16, #tpu.memory_space<vmem>>, vector<1x32x32xbf16>
    %40 = vector.shape_cast %39 : vector<1x32x32xbf16> to vector<32x32xbf16>
    %cst_20 = arith.constant 0.000000e+00 : f32
    %41 = vector.broadcast %cst_20 : f32 to vector<16x32xf32>
    %42 = vector.extract_strided_slice %38 {offsets = [0, 0], sizes = [16, 16], strides = [1, 1]} : vector<16x96xbf16> to vector<16x16xbf16>
    %43 = vector.extract_strided_slice %38 {offsets = [0, 64], sizes = [16, 16], strides = [1, 1]} : vector<16x96xbf16> to vector<16x16xbf16>
    %44 = vector.extract_strided_slice %37 {offsets = [0, 0], sizes = [16, 16], strides = [1, 1]} : vector<32x16xbf16> to vector<16x16xbf16>
    %cst_21 = arith.constant dense<0.000000e+00> : vector<16x16xf32>
    %45 = tpu.matmul %42, %44, %cst_21 {dimension_numbers = #tpu.dot_dimension_numbers<[1], [0], [0], [1], [0, 0, 1, 1], [], []>} : vector<16x16xbf16>, vector<16x16xbf16>, vector<16x16xf32> -> vector<16x16xf32>
    %cst_22 = arith.constant 2.500000e-01 : f32
    %46 = vector.broadcast %cst_22 : f32 to vector<16x16xf32>
    %47 = arith.mulf %45, %46 : vector<16x16xf32>
    %48 = arith.addf %47, %27 : vector<16x16xf32>
    %cst_23 = arith.constant dense<0xFF800000> : vector<16xf32>
    %49 = vector.multi_reduction <maximumf>, %48, %cst_23 [1] : vector<16x16xf32> to vector<16xf32>
    %50 = vector.shape_cast %49 : vector<16xf32> to vector<16x1xf32>
    %51 = vector.broadcast %50 : vector<16x1xf32> to vector<16x16xf32>
    %52 = arith.subf %48, %51 : vector<16x16xf32>
    %53 = math.exp %52 : vector<16x16xf32>
    %cst_24 = arith.constant dense<0.000000e+00> : vector<16xf32>
    %54 = vector.multi_reduction <add>, %53, %cst_24 [1] : vector<16x16xf32> to vector<16xf32>
    %55 = vector.shape_cast %54 : vector<16xf32> to vector<16x1xf32>
    %56 = tpu.reciprocal %55 {approx = true} : vector<16x1xf32> -> vector<16x1xf32>
    %57 = vector.broadcast %56 : vector<16x1xf32> to vector<16x16xf32>
    %58 = arith.mulf %53, %57 : vector<16x16xf32>
    %59 = arith.truncf %58 : vector<16x16xf32> to vector<16x16xbf16>
    %cst_25 = arith.constant dense<0.000000e+00> : vector<16x16xf32>
    %60 = tpu.matmul %59, %43, %cst_25 {dimension_numbers = #tpu.dot_dimension_numbers<[1], [0], [0], [1], [0, 0, 1, 1], [], []>} : vector<16x16xbf16>, vector<16x16xbf16>, vector<16x16xf32> -> vector<16x16xf32>
    %61 = arith.truncf %60 : vector<16x16xf32> to vector<16x16xbf16>
    %62 = vector.extract_strided_slice %40 {offsets = [0, 0], sizes = [16, 32], strides = [1, 1]} : vector<32x32xbf16> to vector<16x32xbf16>
    %cst_26 = arith.constant dense<0.000000e+00> : vector<16x32xf32>
    %63 = tpu.matmul %61, %62, %cst_26 {dimension_numbers = #tpu.dot_dimension_numbers<[1], [0], [0], [1], [0, 0, 1, 1], [], []>} : vector<16x16xbf16>, vector<16x32xbf16>, vector<16x32xf32> -> vector<16x32xf32>
    %64 = arith.addf %41, %63 : vector<16x32xf32>
    %65 = vector.extract_strided_slice %38 {offsets = [0, 16], sizes = [16, 16], strides = [1, 1]} : vector<16x96xbf16> to vector<16x16xbf16>
    %66 = vector.extract_strided_slice %38 {offsets = [0, 80], sizes = [16, 16], strides = [1, 1]} : vector<16x96xbf16> to vector<16x16xbf16>
    %67 = vector.extract_strided_slice %37 {offsets = [16, 0], sizes = [16, 16], strides = [1, 1]} : vector<32x16xbf16> to vector<16x16xbf16>
    %cst_27 = arith.constant dense<0.000000e+00> : vector<16x16xf32>
    %68 = tpu.matmul %65, %67, %cst_27 {dimension_numbers = #tpu.dot_dimension_numbers<[1], [0], [0], [1], [0, 0, 1, 1], [], []>} : vector<16x16xbf16>, vector<16x16xbf16>, vector<16x16xf32> -> vector<16x16xf32>
    %cst_28 = arith.constant 2.500000e-01 : f32
    %69 = vector.broadcast %cst_28 : f32 to vector<16x16xf32>
    %70 = arith.mulf %68, %69 : vector<16x16xf32>
    %71 = arith.addf %70, %27 : vector<16x16xf32>
    %cst_29 = arith.constant dense<0xFF800000> : vector<16xf32>
    %72 = vector.multi_reduction <maximumf>, %71, %cst_29 [1] : vector<16x16xf32> to vector<16xf32>
    %73 = vector.shape_cast %72 : vector<16xf32> to vector<16x1xf32>
    %74 = vector.broadcast %73 : vector<16x1xf32> to vector<16x16xf32>
    %75 = arith.subf %71, %74 : vector<16x16xf32>
    %76 = math.exp %75 : vector<16x16xf32>
    %cst_30 = arith.constant dense<0.000000e+00> : vector<16xf32>
    %77 = vector.multi_reduction <add>, %76, %cst_30 [1] : vector<16x16xf32> to vector<16xf32>
    %78 = vector.shape_cast %77 : vector<16xf32> to vector<16x1xf32>
    %79 = tpu.reciprocal %78 {approx = true} : vector<16x1xf32> -> vector<16x1xf32>
    %80 = vector.broadcast %79 : vector<16x1xf32> to vector<16x16xf32>
    %81 = arith.mulf %76, %80 : vector<16x16xf32>
    %82 = arith.truncf %81 : vector<16x16xf32> to vector<16x16xbf16>
    %cst_31 = arith.constant dense<0.000000e+00> : vector<16x16xf32>
    %83 = tpu.matmul %82, %66, %cst_31 {dimension_numbers = #tpu.dot_dimension_numbers<[1], [0], [0], [1], [0, 0, 1, 1], [], []>} : vector<16x16xbf16>, vector<16x16xbf16>, vector<16x16xf32> -> vector<16x16xf32>
    %84 = arith.truncf %83 : vector<16x16xf32> to vector<16x16xbf16>
    %85 = vector.extract_strided_slice %40 {offsets = [16, 0], sizes = [16, 32], strides = [1, 1]} : vector<32x32xbf16> to vector<16x32xbf16>
    %cst_32 = arith.constant dense<0.000000e+00> : vector<16x32xf32>
    %86 = tpu.matmul %84, %85, %cst_32 {dimension_numbers = #tpu.dot_dimension_numbers<[1], [0], [0], [1], [0, 0, 1, 1], [], []>} : vector<16x16xbf16>, vector<16x32xbf16>, vector<16x32xf32> -> vector<16x32xf32>
    %87 = arith.addf %64, %86 : vector<16x32xf32>
    %c5 = arith.constant 5 : index
    %c0_33 = arith.constant 0 : index
    %88 = vector.load %arg3[%c5, %c0_33] : memref<24x128xf32, #tpu.memory_space<vmem>>, vector<1x32xf32>
    %89 = vector.broadcast %88 : vector<1x32xf32> to vector<16x32xf32>
    %90 = arith.addf %87, %89 : vector<16x32xf32>
    %91 = arith.addf %90, %25 : vector<16x32xf32>
    %c6 = arith.constant 6 : index
    %c0_34 = arith.constant 0 : index
    %92 = vector.load %arg3[%c6, %c0_34] : memref<24x128xf32, #tpu.memory_space<vmem>>, vector<1x32xf32>
    %c7 = arith.constant 7 : index
    %c0_35 = arith.constant 0 : index
    %93 = vector.load %arg3[%c7, %c0_35] : memref<24x128xf32, #tpu.memory_space<vmem>>, vector<1x32xf32>
    %cst_36 = arith.constant dense<0.000000e+00> : vector<16xf32>
    %94 = vector.multi_reduction <add>, %91, %cst_36 [1] : vector<16x32xf32> to vector<16xf32>
    %95 = vector.shape_cast %94 : vector<16xf32> to vector<16x1xf32>
    %cst_37 = arith.constant 3.200000e+01 : f32
    %96 = vector.broadcast %cst_37 : f32 to vector<16x1xf32>
    %97 = arith.divf %95, %96 : vector<16x1xf32>
    %98 = vector.broadcast %97 : vector<16x1xf32> to vector<16x32xf32>
    %99 = arith.subf %91, %98 : vector<16x32xf32>
    %100 = arith.mulf %99, %99 : vector<16x32xf32>
    %cst_38 = arith.constant dense<0.000000e+00> : vector<16xf32>
    %101 = vector.multi_reduction <add>, %100, %cst_38 [1] : vector<16x32xf32> to vector<16xf32>
    %102 = vector.shape_cast %101 : vector<16xf32> to vector<16x1xf32>
    %cst_39 = arith.constant 3.200000e+01 : f32
    %103 = vector.broadcast %cst_39 : f32 to vector<16x1xf32>
    %104 = arith.divf %102, %103 : vector<16x1xf32>
    %105 = vector.broadcast %97 : vector<16x1xf32> to vector<16x32xf32>
    %106 = arith.subf %91, %105 : vector<16x32xf32>
    %cst_40 = arith.constant 9.99999996E-13 : f32
    %107 = vector.broadcast %cst_40 : f32 to vector<16x1xf32>
    %108 = arith.addf %104, %107 : vector<16x1xf32>
    %109 = math.rsqrt %108 : vector<16x1xf32>
    %110 = vector.broadcast %109 : vector<16x1xf32> to vector<16x32xf32>
    %111 = arith.mulf %106, %110 : vector<16x32xf32>
    %112 = vector.broadcast %92 : vector<1x32xf32> to vector<16x32xf32>
    %113 = arith.mulf %111, %112 : vector<16x32xf32>
    %114 = vector.broadcast %93 : vector<1x32xf32> to vector<16x32xf32>
    %115 = arith.addf %113, %114 : vector<16x32xf32>
    %116 = arith.truncf %115 : vector<16x32xf32> to vector<16x32xbf16>
    %c0_41 = arith.constant 0 : index
    %c0_42 = arith.constant 0 : index
    %c0_43 = arith.constant 0 : index
    %117 = vector.load %arg6[%c0_41, %c0_42, %c0_43] : memref<2x32x64xbf16, #tpu.memory_space<vmem>>, vector<1x32x64xbf16>
    %118 = vector.shape_cast %117 : vector<1x32x64xbf16> to vector<32x64xbf16>
    %cst_44 = arith.constant dense<0.000000e+00> : vector<16x64xf32>
    %119 = tpu.matmul %116, %118, %cst_44 {dimension_numbers = #tpu.dot_dimension_numbers<[1], [0], [0], [1], [0, 0, 1, 1], [], []>} : vector<16x32xbf16>, vector<32x64xbf16>, vector<16x64xf32> -> vector<16x64xf32>
    %c8 = arith.constant 8 : index
    %c0_45 = arith.constant 0 : index
    %120 = vector.load %arg3[%c8, %c0_45] : memref<24x128xf32, #tpu.memory_space<vmem>>, vector<1x64xf32>
    %121 = vector.broadcast %120 : vector<1x64xf32> to vector<16x64xf32>
    %122 = arith.addf %119, %121 : vector<16x64xf32>
    %123 = arith.mulf %122, %122 : vector<16x64xf32>
    %124 = arith.mulf %122, %123 : vector<16x64xf32>
    %cst_46 = arith.constant 4.471500e-02 : f32
    %125 = vector.broadcast %cst_46 : f32 to vector<16x64xf32>
    %126 = arith.mulf %125, %124 : vector<16x64xf32>
    %127 = arith.addf %122, %126 : vector<16x64xf32>
    %cst_47 = arith.constant 0.797884583 : f32
    %128 = vector.broadcast %cst_47 : f32 to vector<16x64xf32>
    %129 = arith.mulf %128, %127 : vector<16x64xf32>
    %130 = math.tanh %129 : vector<16x64xf32>
    %cst_48 = arith.constant 1.000000e+00 : f32
    %131 = vector.broadcast %cst_48 : f32 to vector<16x64xf32>
    %132 = arith.addf %131, %130 : vector<16x64xf32>
    %cst_49 = arith.constant 5.000000e-01 : f32
    %133 = vector.broadcast %cst_49 : f32 to vector<16x64xf32>
    %134 = arith.mulf %133, %132 : vector<16x64xf32>
    %135 = arith.mulf %122, %134 : vector<16x64xf32>
    %136 = arith.truncf %135 : vector<16x64xf32> to vector<16x64xbf16>
    %c0_50 = arith.constant 0 : index
    %c0_51 = arith.constant 0 : index
    %c0_52 = arith.constant 0 : index
    %137 = vector.load %arg7[%c0_50, %c0_51, %c0_52] : memref<2x64x32xbf16, #tpu.memory_space<vmem>>, vector<1x64x32xbf16>
    %138 = vector.shape_cast %137 : vector<1x64x32xbf16> to vector<64x32xbf16>
    %cst_53 = arith.constant dense<0.000000e+00> : vector<16x32xf32>
    %139 = tpu.matmul %136, %138, %cst_53 {dimension_numbers = #tpu.dot_dimension_numbers<[1], [0], [0], [1], [0, 0, 1, 1], [], []>} : vector<16x64xbf16>, vector<64x32xbf16>, vector<16x32xf32> -> vector<16x32xf32>
    %c9 = arith.constant 9 : index
    %c0_54 = arith.constant 0 : index
    %140 = vector.load %arg3[%c9, %c0_54] : memref<24x128xf32, #tpu.memory_space<vmem>>, vector<1x32xf32>
    %141 = vector.broadcast %140 : vector<1x32xf32> to vector<16x32xf32>
    %142 = arith.addf %139, %141 : vector<16x32xf32>
    %143 = arith.addf %142, %115 : vector<16x32xf32>
    %c10 = arith.constant 10 : index
    %c0_55 = arith.constant 0 : index
    %144 = vector.load %arg3[%c10, %c0_55] : memref<24x128xf32, #tpu.memory_space<vmem>>, vector<1x32xf32>
    %c11 = arith.constant 11 : index
    %c0_56 = arith.constant 0 : index
    %145 = vector.load %arg3[%c11, %c0_56] : memref<24x128xf32, #tpu.memory_space<vmem>>, vector<1x32xf32>
    %cst_57 = arith.constant dense<0.000000e+00> : vector<16xf32>
    %146 = vector.multi_reduction <add>, %143, %cst_57 [1] : vector<16x32xf32> to vector<16xf32>
    %147 = vector.shape_cast %146 : vector<16xf32> to vector<16x1xf32>
    %cst_58 = arith.constant 3.200000e+01 : f32
    %148 = vector.broadcast %cst_58 : f32 to vector<16x1xf32>
    %149 = arith.divf %147, %148 : vector<16x1xf32>
    %150 = vector.broadcast %149 : vector<16x1xf32> to vector<16x32xf32>
    %151 = arith.subf %143, %150 : vector<16x32xf32>
    %152 = arith.mulf %151, %151 : vector<16x32xf32>
    %cst_59 = arith.constant dense<0.000000e+00> : vector<16xf32>
    %153 = vector.multi_reduction <add>, %152, %cst_59 [1] : vector<16x32xf32> to vector<16xf32>
    %154 = vector.shape_cast %153 : vector<16xf32> to vector<16x1xf32>
    %cst_60 = arith.constant 3.200000e+01 : f32
    %155 = vector.broadcast %cst_60 : f32 to vector<16x1xf32>
    %156 = arith.divf %154, %155 : vector<16x1xf32>
    %157 = vector.broadcast %149 : vector<16x1xf32> to vector<16x32xf32>
    %158 = arith.subf %143, %157 : vector<16x32xf32>
    %cst_61 = arith.constant 9.99999996E-13 : f32
    %159 = vector.broadcast %cst_61 : f32 to vector<16x1xf32>
    %160 = arith.addf %156, %159 : vector<16x1xf32>
    %161 = math.rsqrt %160 : vector<16x1xf32>
    %162 = vector.broadcast %161 : vector<16x1xf32> to vector<16x32xf32>
    %163 = arith.mulf %158, %162 : vector<16x32xf32>
    %164 = vector.broadcast %144 : vector<1x32xf32> to vector<16x32xf32>
    %165 = arith.mulf %163, %164 : vector<16x32xf32>
    %166 = vector.broadcast %145 : vector<1x32xf32> to vector<16x32xf32>
    %167 = arith.addf %165, %166 : vector<16x32xf32>
    %168 = arith.truncf %167 : vector<16x32xf32> to vector<16x32xbf16>
    %c1_62 = arith.constant 1 : index
    %c0_63 = arith.constant 0 : index
    %c0_64 = arith.constant 0 : index
    %169 = vector.load %arg4[%c1_62, %c0_63, %c0_64] : memref<2x32x96xbf16, #tpu.memory_space<vmem>>, vector<1x32x96xbf16>
    %170 = vector.shape_cast %169 : vector<1x32x96xbf16> to vector<32x96xbf16>
    %cst_65 = arith.constant dense<0.000000e+00> : vector<16x96xf32>
    %171 = tpu.matmul %168, %170, %cst_65 {dimension_numbers = #tpu.dot_dimension_numbers<[1], [0], [0], [1], [0, 0, 1, 1], [], []>} : vector<16x32xbf16>, vector<32x96xbf16>, vector<16x96xf32> -> vector<16x96xf32>
    %c12 = arith.constant 12 : index
    %c0_66 = arith.constant 0 : index
    %172 = vector.load %arg3[%c12, %c0_66] : memref<24x128xf32, #tpu.memory_space<vmem>>, vector<1x96xf32>
    %173 = vector.broadcast %172 : vector<1x96xf32> to vector<16x96xf32>
    %174 = arith.addf %171, %173 : vector<16x96xf32>
    %175 = vector.extract_strided_slice %174 {offsets = [0, 32], sizes = [16, 32], strides = [1, 1]} : vector<16x96xf32> to vector<16x32xf32>
    %176 = tpu.transpose %175, [1, 0] : vector<16x32xf32> -> vector<32x16xf32>
    %177 = arith.truncf %176 : vector<32x16xf32> to vector<32x16xbf16>
    %178 = arith.truncf %174 : vector<16x96xf32> to vector<16x96xbf16>
    %c1_67 = arith.constant 1 : index
    %c0_68 = arith.constant 0 : index
    %c0_69 = arith.constant 0 : index
    %179 = vector.load %arg5[%c1_67, %c0_68, %c0_69] : memref<2x32x32xbf16, #tpu.memory_space<vmem>>, vector<1x32x32xbf16>
    %180 = vector.shape_cast %179 : vector<1x32x32xbf16> to vector<32x32xbf16>
    %cst_70 = arith.constant 0.000000e+00 : f32
    %181 = vector.broadcast %cst_70 : f32 to vector<16x32xf32>
    %182 = vector.extract_strided_slice %178 {offsets = [0, 0], sizes = [16, 16], strides = [1, 1]} : vector<16x96xbf16> to vector<16x16xbf16>
    %183 = vector.extract_strided_slice %178 {offsets = [0, 64], sizes = [16, 16], strides = [1, 1]} : vector<16x96xbf16> to vector<16x16xbf16>
    %184 = vector.extract_strided_slice %177 {offsets = [0, 0], sizes = [16, 16], strides = [1, 1]} : vector<32x16xbf16> to vector<16x16xbf16>
    %cst_71 = arith.constant dense<0.000000e+00> : vector<16x16xf32>
    %185 = tpu.matmul %182, %184, %cst_71 {dimension_numbers = #tpu.dot_dimension_numbers<[1], [0], [0], [1], [0, 0, 1, 1], [], []>} : vector<16x16xbf16>, vector<16x16xbf16>, vector<16x16xf32> -> vector<16x16xf32>
    %cst_72 = arith.constant 2.500000e-01 : f32
    %186 = vector.broadcast %cst_72 : f32 to vector<16x16xf32>
    %187 = arith.mulf %185, %186 : vector<16x16xf32>
    %188 = arith.addf %187, %27 : vector<16x16xf32>
    %cst_73 = arith.constant dense<0xFF800000> : vector<16xf32>
    %189 = vector.multi_reduction <maximumf>, %188, %cst_73 [1] : vector<16x16xf32> to vector<16xf32>
    %190 = vector.shape_cast %189 : vector<16xf32> to vector<16x1xf32>
    %191 = vector.broadcast %190 : vector<16x1xf32> to vector<16x16xf32>
    %192 = arith.subf %188, %191 : vector<16x16xf32>
    %193 = math.exp %192 : vector<16x16xf32>
    %cst_74 = arith.constant dense<0.000000e+00> : vector<16xf32>
    %194 = vector.multi_reduction <add>, %193, %cst_74 [1] : vector<16x16xf32> to vector<16xf32>
    %195 = vector.shape_cast %194 : vector<16xf32> to vector<16x1xf32>
    %196 = tpu.reciprocal %195 {approx = true} : vector<16x1xf32> -> vector<16x1xf32>
    %197 = vector.broadcast %196 : vector<16x1xf32> to vector<16x16xf32>
    %198 = arith.mulf %193, %197 : vector<16x16xf32>
    %199 = arith.truncf %198 : vector<16x16xf32> to vector<16x16xbf16>
    %cst_75 = arith.constant dense<0.000000e+00> : vector<16x16xf32>
    %200 = tpu.matmul %199, %183, %cst_75 {dimension_numbers = #tpu.dot_dimension_numbers<[1], [0], [0], [1], [0, 0, 1, 1], [], []>} : vector<16x16xbf16>, vector<16x16xbf16>, vector<16x16xf32> -> vector<16x16xf32>
    %201 = arith.truncf %200 : vector<16x16xf32> to vector<16x16xbf16>
    %202 = vector.extract_strided_slice %180 {offsets = [0, 0], sizes = [16, 32], strides = [1, 1]} : vector<32x32xbf16> to vector<16x32xbf16>
    %cst_76 = arith.constant dense<0.000000e+00> : vector<16x32xf32>
    %203 = tpu.matmul %201, %202, %cst_76 {dimension_numbers = #tpu.dot_dimension_numbers<[1], [0], [0], [1], [0, 0, 1, 1], [], []>} : vector<16x16xbf16>, vector<16x32xbf16>, vector<16x32xf32> -> vector<16x32xf32>
    %204 = arith.addf %181, %203 : vector<16x32xf32>
    %205 = vector.extract_strided_slice %178 {offsets = [0, 16], sizes = [16, 16], strides = [1, 1]} : vector<16x96xbf16> to vector<16x16xbf16>
    %206 = vector.extract_strided_slice %178 {offsets = [0, 80], sizes = [16, 16], strides = [1, 1]} : vector<16x96xbf16> to vector<16x16xbf16>
    %207 = vector.extract_strided_slice %177 {offsets = [16, 0], sizes = [16, 16], strides = [1, 1]} : vector<32x16xbf16> to vector<16x16xbf16>
    %cst_77 = arith.constant dense<0.000000e+00> : vector<16x16xf32>
    %208 = tpu.matmul %205, %207, %cst_77 {dimension_numbers = #tpu.dot_dimension_numbers<[1], [0], [0], [1], [0, 0, 1, 1], [], []>} : vector<16x16xbf16>, vector<16x16xbf16>, vector<16x16xf32> -> vector<16x16xf32>
    %cst_78 = arith.constant 2.500000e-01 : f32
    %209 = vector.broadcast %cst_78 : f32 to vector<16x16xf32>
    %210 = arith.mulf %208, %209 : vector<16x16xf32>
    %211 = arith.addf %210, %27 : vector<16x16xf32>
    %cst_79 = arith.constant dense<0xFF800000> : vector<16xf32>
    %212 = vector.multi_reduction <maximumf>, %211, %cst_79 [1] : vector<16x16xf32> to vector<16xf32>
    %213 = vector.shape_cast %212 : vector<16xf32> to vector<16x1xf32>
    %214 = vector.broadcast %213 : vector<16x1xf32> to vector<16x16xf32>
    %215 = arith.subf %211, %214 : vector<16x16xf32>
    %216 = math.exp %215 : vector<16x16xf32>
    %cst_80 = arith.constant dense<0.000000e+00> : vector<16xf32>
    %217 = vector.multi_reduction <add>, %216, %cst_80 [1] : vector<16x16xf32> to vector<16xf32>
    %218 = vector.shape_cast %217 : vector<16xf32> to vector<16x1xf32>
    %219 = tpu.reciprocal %218 {approx = true} : vector<16x1xf32> -> vector<16x1xf32>
    %220 = vector.broadcast %219 : vector<16x1xf32> to vector<16x16xf32>
    %221 = arith.mulf %216, %220 : vector<16x16xf32>
    %222 = arith.truncf %221 : vector<16x16xf32> to vector<16x16xbf16>
    %cst_81 = arith.constant dense<0.000000e+00> : vector<16x16xf32>
    %223 = tpu.matmul %222, %206, %cst_81 {dimension_numbers = #tpu.dot_dimension_numbers<[1], [0], [0], [1], [0, 0, 1, 1], [], []>} : vector<16x16xbf16>, vector<16x16xbf16>, vector<16x16xf32> -> vector<16x16xf32>
    %224 = arith.truncf %223 : vector<16x16xf32> to vector<16x16xbf16>
    %225 = vector.extract_strided_slice %180 {offsets = [16, 0], sizes = [16, 32], strides = [1, 1]} : vector<32x32xbf16> to vector<16x32xbf16>
    %cst_82 = arith.constant dense<0.000000e+00> : vector<16x32xf32>
    %226 = tpu.matmul %224, %225, %cst_82 {dimension_numbers = #tpu.dot_dimension_numbers<[1], [0], [0], [1], [0, 0, 1, 1], [], []>} : vector<16x16xbf16>, vector<16x32xbf16>, vector<16x32xf32> -> vector<16x32xf32>
    %227 = arith.addf %204, %226 : vector<16x32xf32>
    %c13 = arith.constant 13 : index
    %c0_83 = arith.constant 0 : index
    %228 = vector.load %arg3[%c13, %c0_83] : memref<24x128xf32, #tpu.memory_space<vmem>>, vector<1x32xf32>
    %229 = vector.broadcast %228 : vector<1x32xf32> to vector<16x32xf32>
    %230 = arith.addf %227, %229 : vector<16x32xf32>
    %231 = arith.addf %230, %167 : vector<16x32xf32>
    %c14 = arith.constant 14 : index
    %c0_84 = arith.constant 0 : index
    %232 = vector.load %arg3[%c14, %c0_84] : memref<24x128xf32, #tpu.memory_space<vmem>>, vector<1x32xf32>
    %c15 = arith.constant 15 : index
    %c0_85 = arith.constant 0 : index
    %233 = vector.load %arg3[%c15, %c0_85] : memref<24x128xf32, #tpu.memory_space<vmem>>, vector<1x32xf32>
    %cst_86 = arith.constant dense<0.000000e+00> : vector<16xf32>
    %234 = vector.multi_reduction <add>, %231, %cst_86 [1] : vector<16x32xf32> to vector<16xf32>
    %235 = vector.shape_cast %234 : vector<16xf32> to vector<16x1xf32>
    %cst_87 = arith.constant 3.200000e+01 : f32
    %236 = vector.broadcast %cst_87 : f32 to vector<16x1xf32>
    %237 = arith.divf %235, %236 : vector<16x1xf32>
    %238 = vector.broadcast %237 : vector<16x1xf32> to vector<16x32xf32>
    %239 = arith.subf %231, %238 : vector<16x32xf32>
    %240 = arith.mulf %239, %239 : vector<16x32xf32>
    %cst_88 = arith.constant dense<0.000000e+00> : vector<16xf32>
    %241 = vector.multi_reduction <add>, %240, %cst_88 [1] : vector<16x32xf32> to vector<16xf32>
    %242 = vector.shape_cast %241 : vector<16xf32> to vector<16x1xf32>
    %cst_89 = arith.constant 3.200000e+01 : f32
    %243 = vector.broadcast %cst_89 : f32 to vector<16x1xf32>
    %244 = arith.divf %242, %243 : vector<16x1xf32>
    %245 = vector.broadcast %237 : vector<16x1xf32> to vector<16x32xf32>
    %246 = arith.subf %231, %245 : vector<16x32xf32>
    %cst_90 = arith.constant 9.99999996E-13 : f32
    %247 = vector.broadcast %cst_90 : f32 to vector<16x1xf32>
    %248 = arith.addf %244, %247 : vector<16x1xf32>
    %249 = math.rsqrt %248 : vector<16x1xf32>
    %250 = vector.broadcast %249 : vector<16x1xf32> to vector<16x32xf32>
    %251 = arith.mulf %246, %250 : vector<16x32xf32>
    %252 = vector.broadcast %232 : vector<1x32xf32> to vector<16x32xf32>
    %253 = arith.mulf %251, %252 : vector<16x32xf32>
    %254 = vector.broadcast %233 : vector<1x32xf32> to vector<16x32xf32>
    %255 = arith.addf %253, %254 : vector<16x32xf32>
    %256 = arith.truncf %255 : vector<16x32xf32> to vector<16x32xbf16>
    %c1_91 = arith.constant 1 : index
    %c0_92 = arith.constant 0 : index
    %c0_93 = arith.constant 0 : index
    %257 = vector.load %arg6[%c1_91, %c0_92, %c0_93] : memref<2x32x64xbf16, #tpu.memory_space<vmem>>, vector<1x32x64xbf16>
    %258 = vector.shape_cast %257 : vector<1x32x64xbf16> to vector<32x64xbf16>
    %cst_94 = arith.constant dense<0.000000e+00> : vector<16x64xf32>
    %259 = tpu.matmul %256, %258, %cst_94 {dimension_numbers = #tpu.dot_dimension_numbers<[1], [0], [0], [1], [0, 0, 1, 1], [], []>} : vector<16x32xbf16>, vector<32x64xbf16>, vector<16x64xf32> -> vector<16x64xf32>
    %c16 = arith.constant 16 : index
    %c0_95 = arith.constant 0 : index
    %260 = vector.load %arg3[%c16, %c0_95] : memref<24x128xf32, #tpu.memory_space<vmem>>, vector<1x64xf32>
    %261 = vector.broadcast %260 : vector<1x64xf32> to vector<16x64xf32>
    %262 = arith.addf %259, %261 : vector<16x64xf32>
    %263 = arith.mulf %262, %262 : vector<16x64xf32>
    %264 = arith.mulf %262, %263 : vector<16x64xf32>
    %cst_96 = arith.constant 4.471500e-02 : f32
    %265 = vector.broadcast %cst_96 : f32 to vector<16x64xf32>
    %266 = arith.mulf %265, %264 : vector<16x64xf32>
    %267 = arith.addf %262, %266 : vector<16x64xf32>
    %cst_97 = arith.constant 0.797884583 : f32
    %268 = vector.broadcast %cst_97 : f32 to vector<16x64xf32>
    %269 = arith.mulf %268, %267 : vector<16x64xf32>
    %270 = math.tanh %269 : vector<16x64xf32>
    %cst_98 = arith.constant 1.000000e+00 : f32
    %271 = vector.broadcast %cst_98 : f32 to vector<16x64xf32>
    %272 = arith.addf %271, %270 : vector<16x64xf32>
    %cst_99 = arith.constant 5.000000e-01 : f32
    %273 = vector.broadcast %cst_99 : f32 to vector<16x64xf32>
    %274 = arith.mulf %273, %272 : vector<16x64xf32>
    %275 = arith.mulf %262, %274 : vector<16x64xf32>
    %276 = arith.truncf %275 : vector<16x64xf32> to vector<16x64xbf16>
    %c1_100 = arith.constant 1 : index
    %c0_101 = arith.constant 0 : index
    %c0_102 = arith.constant 0 : index
    %277 = vector.load %arg7[%c1_100, %c0_101, %c0_102] : memref<2x64x32xbf16, #tpu.memory_space<vmem>>, vector<1x64x32xbf16>
    %278 = vector.shape_cast %277 : vector<1x64x32xbf16> to vector<64x32xbf16>
    %cst_103 = arith.constant dense<0.000000e+00> : vector<16x32xf32>
    %279 = tpu.matmul %276, %278, %cst_103 {dimension_numbers = #tpu.dot_dimension_numbers<[1], [0], [0], [1], [0, 0, 1, 1], [], []>} : vector<16x64xbf16>, vector<64x32xbf16>, vector<16x32xf32> -> vector<16x32xf32>
    %c17 = arith.constant 17 : index
    %c0_104 = arith.constant 0 : index
    %280 = vector.load %arg3[%c17, %c0_104] : memref<24x128xf32, #tpu.memory_space<vmem>>, vector<1x32xf32>
    %281 = vector.broadcast %280 : vector<1x32xf32> to vector<16x32xf32>
    %282 = arith.addf %279, %281 : vector<16x32xf32>
    %283 = arith.addf %282, %255 : vector<16x32xf32>
    %c18 = arith.constant 18 : index
    %c0_105 = arith.constant 0 : index
    %284 = vector.load %arg3[%c18, %c0_105] : memref<24x128xf32, #tpu.memory_space<vmem>>, vector<1x32xf32>
    %c19 = arith.constant 19 : index
    %c0_106 = arith.constant 0 : index
    %285 = vector.load %arg3[%c19, %c0_106] : memref<24x128xf32, #tpu.memory_space<vmem>>, vector<1x32xf32>
    %cst_107 = arith.constant dense<0.000000e+00> : vector<16xf32>
    %286 = vector.multi_reduction <add>, %283, %cst_107 [1] : vector<16x32xf32> to vector<16xf32>
    %287 = vector.shape_cast %286 : vector<16xf32> to vector<16x1xf32>
    %cst_108 = arith.constant 3.200000e+01 : f32
    %288 = vector.broadcast %cst_108 : f32 to vector<16x1xf32>
    %289 = arith.divf %287, %288 : vector<16x1xf32>
    %290 = vector.broadcast %289 : vector<16x1xf32> to vector<16x32xf32>
    %291 = arith.subf %283, %290 : vector<16x32xf32>
    %292 = arith.mulf %291, %291 : vector<16x32xf32>
    %cst_109 = arith.constant dense<0.000000e+00> : vector<16xf32>
    %293 = vector.multi_reduction <add>, %292, %cst_109 [1] : vector<16x32xf32> to vector<16xf32>
    %294 = vector.shape_cast %293 : vector<16xf32> to vector<16x1xf32>
    %cst_110 = arith.constant 3.200000e+01 : f32
    %295 = vector.broadcast %cst_110 : f32 to vector<16x1xf32>
    %296 = arith.divf %294, %295 : vector<16x1xf32>
    %297 = vector.broadcast %289 : vector<16x1xf32> to vector<16x32xf32>
    %298 = arith.subf %283, %297 : vector<16x32xf32>
    %cst_111 = arith.constant 9.99999996E-13 : f32
    %299 = vector.broadcast %cst_111 : f32 to vector<16x1xf32>
    %300 = arith.addf %296, %299 : vector<16x1xf32>
    %301 = math.rsqrt %300 : vector<16x1xf32>
    %302 = vector.broadcast %301 : vector<16x1xf32> to vector<16x32xf32>
    %303 = arith.mulf %298, %302 : vector<16x32xf32>
    %304 = vector.broadcast %284 : vector<1x32xf32> to vector<16x32xf32>
    %305 = arith.mulf %303, %304 : vector<16x32xf32>
    %306 = vector.broadcast %285 : vector<1x32xf32> to vector<16x32xf32>
    %307 = arith.addf %305, %306 : vector<16x32xf32>
    %308 = arith.truncf %307 : vector<16x32xf32> to vector<16x32xbf16>
    %c0_112 = arith.constant 0 : index
    %c0_113 = arith.constant 0 : index
    %309 = vector.load %arg8[%c0_112, %c0_113] : memref<32x32xbf16, #tpu.memory_space<vmem>>, vector<32x32xbf16>
    %cst_114 = arith.constant dense<0.000000e+00> : vector<16x32xf32>
    %310 = tpu.matmul %308, %309, %cst_114 {dimension_numbers = #tpu.dot_dimension_numbers<[1], [0], [0], [1], [0, 0, 1, 1], [], []>} : vector<16x32xbf16>, vector<32x32xbf16>, vector<16x32xf32> -> vector<16x32xf32>
    %c2 = arith.constant 2 : index
    %c0_115 = arith.constant 0 : index
    %311 = vector.load %arg3[%c2, %c0_115] : memref<24x128xf32, #tpu.memory_space<vmem>>, vector<1x32xf32>
    %312 = vector.broadcast %311 : vector<1x32xf32> to vector<16x32xf32>
    %313 = arith.addf %310, %312 : vector<16x32xf32>
    %314 = math.tanh %313 : vector<16x32xf32>
    %315 = arith.truncf %314 : vector<16x32xf32> to vector<16x32xbf16>
    %c0_116 = arith.constant 0 : index
    %c0_117 = arith.constant 0 : index
    %316 = vector.load %arg9[%c0_116, %c0_117] : memref<32x128xbf16, #tpu.memory_space<vmem>>, vector<32x128xbf16>
    %cst_118 = arith.constant dense<0.000000e+00> : vector<16x128xf32>
    %317 = tpu.matmul %315, %316, %cst_118 {dimension_numbers = #tpu.dot_dimension_numbers<[1], [0], [0], [1], [0, 0, 1, 1], [], []>} : vector<16x32xbf16>, vector<32x128xbf16>, vector<16x128xf32> -> vector<16x128xf32>
    %c3 = arith.constant 3 : index
    %c0_119 = arith.constant 0 : index
    %318 = vector.load %arg3[%c3, %c0_119] : memref<24x128xf32, #tpu.memory_space<vmem>>, vector<1x128xf32>
    %319 = vector.broadcast %318 : vector<1x128xf32> to vector<16x128xf32>
    %320 = arith.addf %317, %319 : vector<16x128xf32>
    %c0_120 = arith.constant 0 : index
    %c0_121 = arith.constant 0 : index
    %c0_122 = arith.constant 0 : index
    %321 = vector.load %arg10[%c0_120, %c0_121, %c0_122] : memref<1x16x128xf32, #tpu.memory_space<vmem>>, vector<1x16x128xf32>
    %322 = vector.shape_cast %321 : vector<1x16x128xf32> to vector<16x128xf32>
    %323 = vector.shape_cast %320 : vector<16x128xf32> to vector<1x16x128xf32>
    tpu.vector_store %arg10[%c0_120, %c0_121, %c0_122], %323 {strides = array<i32>} : memref<1x16x128xf32, #tpu.memory_space<vmem>>, vector<1x16x128xf32>,
    return
  }
  func.func @transform_0(%arg0: i32) -> (i32, i32, i32) {
    %c0_i32 = arith.constant 0 : i32
    %c0_i32_0 = arith.constant 0 : i32
    %c0_i32_1 = arith.constant 0 : i32
    return %arg0, %c0_i32, %c0_i32_0 : i32, i32, i32
  }
  func.func @transform_1(%arg0: i32) -> (i32, i32, i32) {
    %c0_i32 = arith.constant 0 : i32
    %c0_i32_0 = arith.constant 0 : i32
    %c0_i32_1 = arith.constant 0 : i32
    return %arg0, %c0_i32, %c0_i32_0 : i32, i32, i32
  }
  func.func @transform_2(%arg0: i32) -> (i32, i32) {
    %c0_i32 = arith.constant 0 : i32
    %c0_i32_0 = arith.constant 0 : i32
    %c0_i32_1 = arith.constant 0 : i32
    return %c0_i32, %c0_i32_0 : i32, i32
  }
  func.func @transform_3(%arg0: i32) -> (i32, i32, i32) {
    %c0_i32 = arith.constant 0 : i32
    %c0_i32_0 = arith.constant 0 : i32
    %c0_i32_1 = arith.constant 0 : i32
    %c0_i32_2 = arith.constant 0 : i32
    return %c0_i32, %c0_i32_0, %c0_i32_1 : i32, i32, i32
  }
  func.func @transform_4(%arg0: i32) -> (i32, i32, i32) {
    %c0_i32 = arith.constant 0 : i32
    %c0_i32_0 = arith.constant 0 : i32
    %c0_i32_1 = arith.constant 0 : i32
    %c0_i32_2 = arith.constant 0 : i32
    return %c0_i32, %c0_i32_0, %c0_i32_1 : i32, i32, i32
  }
  func.func @transform_5(%arg0: i32) -> (i32, i32, i32) {
    %c0_i32 = arith.constant 0 : i32
    %c0_i32_0 = arith.constant 0 : i32
    %c0_i32_1 = arith.constant 0 : i32
    %c0_i32_2 = arith.constant 0 : i32
    return %c0_i32, %c0_i32_0, %c0_i32_1 : i32, i32, i32
  }
  func.func @transform_6(%arg0: i32) -> (i32, i32, i32) {
    %c0_i32 = arith.constant 0 : i32
    %c0_i32_0 = arith.constant 0 : i32
    %c0_i32_1 = arith.constant 0 : i32
    %c0_i32_2 = arith.constant 0 : i32
    return %c0_i32, %c0_i32_0, %c0_i32_1 : i32, i32, i32
  }
  func.func @transform_7(%arg0: i32) -> (i32, i32) {
    %c0_i32 = arith.constant 0 : i32
    %c0_i32_0 = arith.constant 0 : i32
    %c0_i32_1 = arith.constant 0 : i32
    return %c0_i32, %c0_i32_0 : i32, i32
  }
  func.func @transform_8(%arg0: i32) -> (i32, i32) {
    %c0_i32 = arith.constant 0 : i32
    %c0_i32_0 = arith.constant 0 : i32
    %c0_i32_1 = arith.constant 0 : i32
    return %c0_i32, %c0_i32_0 : i32, i32
  }
  func.func @transform_9(%arg0: i32) -> (i32, i32, i32) {
    %c0_i32 = arith.constant 0 : i32
    %c0_i32_0 = arith.constant 0 : i32
    %c0_i32_1 = arith.constant 0 : i32
    return %arg0, %c0_i32, %c0_i32_0 : i32, i32, i32
  }
}

</mosaic_0001>

<bundles_post_ra>
// kernel: tpu_custom_call.1
= control target key start
LH: loop header
LB: loop body
LE: loop exit
PB: predicated region body
PF: predicated region fallthrough
CT: control target
= control target key end

     0   :  { %14 = vsyncpa [#allocation3], 0  ;;  %s2581_s0 = inlined_call_operand.hbm [shape: f32[1,16,32], index: 0, kind: input, shape index: {}]   ;;  %s2582_s1 = inlined_call_operand.hbm [shape: f32[1,16,16], index: 1, kind: input, shape index: {}]   ;;  %s2583_s2 = inlined_call_operand.hbm [shape: f32[24,128], index: 2, kind: input, shape index: {}]   ;;  %s2584_s3 = inlined_call_operand.vmem [shape: bf16[2,32,96], index: 3, kind: input, shape index: {}]   ;;  %s2585_s4 = inlined_call_operand.vmem [shape: bf16[2,32,32], index: 4, kind: input, shape index: {}]   ;;  %s2586_s5 = inlined_call_operand.vmem [shape: bf16[2,32,64], index: 5, kind: input, shape index: {}]   ;;  %s2587_s6 = inlined_call_operand.vmem [shape: bf16[2,64,32], index: 6, kind: input, shape index: {}]   ;;  %s2588_s7 = inlined_call_operand.hbm [shape: bf16[32,32], index: 7, kind: input, shape index: {}]   ;;  %s2589_s8 = inlined_call_operand.hbm [shape: bf16[32,128], index: 8, kind: input, shape index: {}]   ;;  %s2590_s9 = inlined_call_operand.hbm [shape: f32[1,16,128], index: 9, kind: output, shape index: {}]  }
   0x1   :  { %15 = vsyncpa [#allocation6], 0 }
   0x2   :  { %16 = vsyncpa [#allocation9], 0 }
   0x3   :  { %17 = vsyncpa [#allocation4], 0  ;;  %s2242_s30 = smov [#allocation5]   ;;  %s2243_s11 = smov [#allocation8]  }
   0x4   :  { %s35_s10 = sshll.u32 %s2242_s30, 4  ;;  %s67_s12 = sshll.u32 %s2243_s11, 4  ;;  %s36_s10 = int_to_ptr.vmem [resolvable:$true] %s35_s10  ;;  %s68_s12 = int_to_ptr.vmem [resolvable:$true] %s67_s12 }
   0x5   :  { %s2122_s13 = scalar_lea.vmem %s36_s10, 256  ;;  %p2127_p1 = scmp.lt.s32.totalorder %s36_s10, %s36_s10 }
   0x6   :  { %p2123_p0 = scmp.ne.s32.totalorder %s36_s10, %s2122_s13  ;;  %p2128_p2 = scmp.lt.s32.totalorder %s2122_s13, %s2122_s13 }
   0x8   :  { %p2129_p3 = por %p2128_p2, %p2127_p1 }
   0xa   :  { %p2130_p4 = pnand %p2129_p3, %p2123_p0 }
   0xc   :  { %2133 = shalt.err (!%p2130_p4)
}
   0xd   :  { %s2244_s14 = smov 128   ;;  %s2245_s15 = smov 8  }
   0xe   :  { %41 = dma.hbm_to_vmem [thread:$0]  %s2582_s1, 256, %s36_s10, [#allocation6], %s2244_s14, %s2244_s14, %s2245_s15  }
   0xf   :  { %s2142_s18 = scalar_lea.vmem %s68_s12, 256  ;;  %p2147_p6 = scmp.lt.s32.totalorder %s68_s12, %s68_s12 }
  0x10   :  { %p2143_p5 = scmp.ne.s32.totalorder %s68_s12, %s2142_s18  ;;  %p2148_p7 = scmp.lt.s32.totalorder %s2142_s18, %s2142_s18 }
  0x12   :  { %p2149_p8 = por %p2148_p7, %p2147_p6 }
  0x14   :  { %p2150_p9 = pnand %p2149_p8, %p2143_p5 }
  0x16   :  { %2153 = shalt.err (!%p2150_p9)
}
  0x17   :  { %s2246_s19 = smov 64   ;;  %s2247_s20 = smov 4  }
  0x18   :  { %73 = dma.hbm_to_vmem [thread:$0]  %s2588_s7, 256, %s68_s12, [#allocation9], %s2246_s19, %s2246_s19, %s2247_s20  }
  0x19   :  { %s2248_s23 = smov [#allocation2]   ;;  %s2249_s25 = smov [#allocation7]  }
  0x1a   :  { %s23_s24 = sshll.u32 %s2248_s23, 4  ;;  %s47_s1 = sshll.u32 %s2249_s25, 4  ;;  %s24_s24 = int_to_ptr.vmem [resolvable:$true] %s23_s24  ;;  %s48_s1 = int_to_ptr.vmem [resolvable:$true] %s47_s1 }
  0x1b   :  { %s2162_s26 = scalar_lea.vmem %s24_s24, 256  ;;  %p2167_p11 = scmp.lt.s32.totalorder %s24_s24, %s24_s24 }
  0x1c   :  { %p2163_p10 = scmp.ne.s32.totalorder %s24_s24, %s2162_s26  ;;  %p2168_p12 = scmp.lt.s32.totalorder %s2162_s26, %s2162_s26 }
  0x1e   :  { %p2169_p13 = por %p2168_p12, %p2167_p11 }
  0x20   :  { %p2170_p0 = pnand %p2169_p13, %p2163_p10 }
  0x22   :  { %2173 = shalt.err (!%p2170_p0)
}
  0x23   :  { %29 = dma.hbm_to_vmem [thread:$0]  %s2581_s0, 256, %s24_s24, [#allocation3], %s2244_s14, %s2244_s14, %s2245_s15  }
  0x24   :  { %s2182_s7 = scalar_lea.vmem %s48_s1, 384  ;;  %p2187_p2 = scmp.lt.s32.totalorder %s48_s1, %s48_s1 }
  0x25   :  { %p2183_p1 = scmp.ne.s32.totalorder %s48_s1, %s2182_s7  ;;  %p2188_p3 = scmp.lt.s32.totalorder %s2182_s7, %s2182_s7 }
  0x27   :  { %p2189_p4 = por %p2188_p3, %p2187_p2 }
  0x29   :  { %p2190_p5 = pnand %p2189_p4, %p2183_p1 }
  0x2b   :  { %2193 = shalt.err (!%p2190_p5)
}
  0x2c   :  { %53 = dma.hbm_to_vmem [thread:$0]  %s2583_s2, 384, %s48_s1, [#allocation6], %s2244_s14, %s2244_s14, %s2245_s15  }
  0x2d   :  { %s2250_s10 = smov [#allocation10]  }
  0x2e   :  { %s79_s11 = sshll.u32 %s2250_s10, 4  ;;  %s80_s11 = int_to_ptr.vmem [resolvable:$true] %s79_s11 }
  0x2f   :  { %s2202_s12 = scalar_lea.vmem %s80_s11, 256  ;;  %p2207_p7 = scmp.lt.s32.totalorder %s80_s11, %s80_s11 }
  0x30   :  { %p2203_p6 = scmp.ne.s32.totalorder %s80_s11, %s2202_s12  ;;  %p2208_p8 = scmp.lt.s32.totalorder %s2202_s12, %s2202_s12 }
  0x32   :  { %p2209_p9 = por %p2208_p8, %p2207_p7 }
  0x34   :  { %p2210_p10 = pnand %p2209_p9, %p2203_p6 }
  0x36   :  { %2213 = shalt.err (!%p2210_p10)
}
  0x37   :  { %85 = dma.hbm_to_vmem [thread:$0]  %s2589_s8, 256, %s80_s11, [#allocation9], %s2246_s19, %s2246_s19, %s2247_s20  }
  0x38   :  { %2234 = dma.done.wait [#allocation3], 256  }
  0x39   :  { %2235 = vsyncadd [#allocation3], 4294967040 }
  0x3a   :  { %2236 = dma.done.wait [#allocation6], 640  }
  0x3b   :  { %2237 = vsyncadd [#allocation6], 4294966656 }
  0x3c   :  { %2238 = dma.done.wait [#allocation9], 512  }
  0x3d   :  { %2239 = vsyncadd [#allocation9], 4294966784  ;;  %vm106_vm0 = vcmask 261120   ;;  %v102_v0 = vld [vmem:[#allocation2] sm:$0xff]  ;;  %v103_v1 = vld [vmem:[#allocation2 + $0x8] sm:$0xff]  ;;  %v2251_v15 = vmov 0.0  }
  0x3e   :  { %v107_v2 = vsel %vm106_vm0, %v102_v0, 0.0  ;;  %v110_v3 = vsel %vm106_vm0, %v103_v1, 0.0  ;;  %v2026_v14 = vld [vmem:[%s2584_s3 + $0x8] sm:$0xff]   ;;  %1867 = vmatprep.subr.bf16.mxu0 %v2251_v15  ;;  %vm2252_vm1 = vmmov 0   ;;  %v2027_v16 = vld [vmem:[%s2584_s3] sm:$0xff]   ;;  %1875 = vmatprep.subr.bf16.mxu1 %v2251_v15  ;;  %s2253_s18 = smov 96  }
  0x3f   :  { %108 = vadd.xlane.f32.xlu0 %v107_v2  ;;  %1871 = vmatprep.mubr.msk.bf16.mxu0 %vm2252_vm1, %v2251_v15  ;;  %v1731_v25 = vld [vmem:[#allocation7] ss:$0 sm:$0xff]  ;;  %v1732_v29 = vld [vmem:[#allocation7 + $0x1] ss:$0 sm:$0xff]  ;;  %v1733_v34 = vld [vmem:[#allocation7 + $0x4] ss:$0 sm:$0xff] }
  0x40   :  { %1868 = vmatpush3.bf16.msra.mxu0 %v2026_v14  ;;  %1877 = vmatprep.mubr.msk.bf16.mxu1 %vm2252_vm1, %v2251_v15  ;;  %s2254_s20 = smov 112   ;;  %vm261_vm2 = vcmask 130048   ;;  %v2379_v52 = vld [vmem:[#allocation5] sm:$0xff]  ;;  %v2382_v57 = vld [vmem:[#allocation5 + $0x8] sm:$0xff]  ;;  %s2255_s21 = smov 48   ;;  %vm774_vm3 = vcmask 523264  }
  0x41   :  { %1869 = vmatprep.subr.bf16.mxu0 %v2251_v15 }
  0x43   :  { %111 = vadd.xlane.f32.xlu0 %v110_v3 }
  0x44   :  { %1870 = vmatpush3.bf16.msra.mxu0 %v2027_v16 }
  0x45   :  { %1887 = vmatprep.subr.bf16.mxu0 %v2251_v15 }
  0xc8   :  { %v109_v4 = vpop.xlane.xlu0 %108 }
  0xc9   :  { %v114_v5 = vmul.f32 0.03125, %v109_v4 }
  0xcb   :  { %v116_v6 = vsub.f32 %v102_v0, %v114_v5 }
  0xcc   :  { %v112_v7 = vpop.xlane.xlu0 %111 }
  0xcd   :  { %v115_v8 = vmul.f32 0.03125, %v112_v7  ;;  %v118_v9 = vmul.f32 %v116_v6, %v116_v6 }
  0xcf   :  { %v117_v10 = vsub.f32 %v103_v1, %v115_v8  ;;  %v120_v11 = vsel %vm106_vm0, %v118_v9, 0.0 }
  0xd0   :  { %121 = vadd.xlane.f32.xlu1 %v120_v11 }
  0xd1   :  { %v119_v12 = vmul.f32 %v117_v10, %v117_v10 }
  0xd3   :  { %v123_v13 = vsel %vm106_vm0, %v119_v12, 0.0 }
  0xd4   :  { %124 = vadd.xlane.f32.xlu1 %v123_v13 }
 0x159   :  { %v122_v17 = vpop.xlane.xlu1 %121 }
 0x15a   :  { %v126_v18 = vmul.f32 0.03125, %v122_v17 }
 0x15c   :  { %v128_v19 = vadd.f32 1e-12, %v126_v18 }
 0x15d   :  { %v125_v20 = vpop.xlane.xlu1 %124 }
 0x15e   :  { %2050 = vrsqrt.f32 %v128_v19  ;;  %v127_v21 = vmul.f32 0.03125, %v125_v20 }
 0x160   :  { %v129_v22 = vadd.f32 1e-12, %v127_v21 }
 0x162   :  { %2052 = vrsqrt.f32 %v129_v22 }
 0x16b   :  { %v2051_v23 = vpop.eup %2050 }
 0x16c   :  { %v132_v24 = vmul.f32 %v2051_v23, %v116_v6 }
 0x16e   :  { %v138_v28 = vmul.f32 %v1731_v25, %v132_v24 }
 0x16f   :  { %v2053_v26 = vpop.eup %2052 }
 0x170   :  { %v133_v27 = vmul.f32 %v2053_v26, %v117_v10  ;;  %v2355_v31 = vadd.f32 %v1732_v29, %v138_v28 }
 0x172   :  { %v139_v30 = vmul.f32 %v1731_v25, %v133_v27 }
 0x174   :  { %v2357_v32 = vadd.f32 %v1732_v29, %v139_v30 }
 0x176   :  { %v148_v33 = vpack.c.bf16 %v2357_v32, %v2355_v31 }
 0x178   :  { %1872 = vmatmul.mubr.msk.bf16.vlgmr.msra.gmra.mxu0 %vm106_vm0, %v148_v33 }
 0x179   :  { %1889 = vmatprep.mubr.msk.bf16.mxu0 %vm2252_vm1, %v2251_v15 }
 0x238   :  { %v207_v35 = vpop.f32.mrf.mxu0 }
 0x239   :  { %v208_v36 = vadd.f32 %v1733_v34, %v207_v35 }
 0x23a   :  { %v1873_v37 = vpop.f32.mrf.mxu0 }
 0x23b   :  { %216 = vrot.lane.b32.xlu0 %v208_v36, %s2253_s18 }
 0x23c   :  { %v210_v38 = vpop.f32.mrf.mxu0 }
 0x23d   :  { %v211_v39 = vadd.f32 %v1733_v34, %v210_v38 }
 0x23e   :  { %v1874_v40 = vpop.f32.mrf.mxu0 }
 0x23f   :  { %218 = vrot.lane.b32.xlu1 %v211_v39, %s2253_s18  ;;  %v2366_v41 = vpack.c.bf16 %v211_v39, %v208_v36 }
 0x243   :  { %382 = vrot.lane.b32.xlu1 %v2366_v41, %s2254_s20 }
 0x2ad   :  { %v217_v42 = vpop.permute.xlu0 %216 }
 0x2ae   :  { %222 = vxpose.xlu1.b32.start [1/2] (short) (narrow) %v217_v42, 32 }
 0x2b1   :  { %v219_v43 = vpop.permute.xlu1 %218 }
 0x2b2   :  { %223 = vxpose.xlu1.b32.end [2/2] (short) (narrow) %v219_v43, 32 }
 0x2b5   :  { %v383_v44 = vpop.permute.xlu1 %382 }
 0x32a   :  { %v238_v45 = vpop.trf.xlu1 }
 0x32e   :  { %v239_v46 = vpop.trf.xlu1 }
 0x32f   :  { %v254_v47 = vpack.c.bf16 %v239_v46, %v238_v45 }
 0x331   :  { %1876 = vmatpush3.bf16.msra.mxu1 %v254_v47 }
 0x332   :  { %v240_v48 = vpop.trf.xlu1  ;;  %1881 = vmatprep.subr.bf16.mxu1 %v2251_v15 }
 0x334   :  { %1878 = vmatmul.mubr.msk.bf16.vlgmr.msra.gmra.mxu1 %vm261_vm2, %v2366_v41 }
 0x335   :  { %1883 = vmatprep.mubr.msk.bf16.mxu1 %vm2252_vm1, %v2251_v15 }
 0x336   :  { %v241_v49 = vpop.trf.xlu1 }
 0x337   :  { %v255_v50 = vpack.c.bf16 %v241_v49, %v240_v48  ;;  %v2028_v48 = vld [vmem:[%s2585_s4] sm:$0xff]   ;;  %v2029_v49 = vld [vmem:[%s2585_s4 + $0x8] sm:$0xff]  }
 0x339   :  { %1888 = vmatpush3.bf16.msra.mxu0 %v255_v50 }
 0x33a   :  { %1899 = vmatprep.subr.bf16.mxu0 %v2251_v15 }
 0x33c   :  { %1890 = vmatmul.mubr.msk.bf16.vlgmr.msra.gmra.mxu0 %vm261_vm2, %v383_v44 }
 0x33d   :  { %1901 = vmatprep.mubr.msk.bf16.mxu0 %vm2252_vm1, %v2251_v15  ;;  %1900 = vmatpush3.bf16.msra.mxu0 %v2029_v49  ;;  %v1748_v49 = vld [vmem:[#allocation7 + $0x8] ss:$0 sm:$0xff] }
 0x33e   :  { %1911 = vmatprep.subr.bf16.mxu0 %v2251_v15 }
 0x3f4   :  { %v299_v51 = vpop.f32.mrf.mxu1 }
 0x3f5   :  { %v306_v53 = vmul.f32 0.25, %v299_v51 }
 0x3f6   :  { %v1879_v54 = vpop.f32.mrf.mxu1 }
 0x3f7   :  { %v308_v55 = vadd.f32 %v306_v53, %v2379_v52 }
 0x3f8   :  { %v302_v56 = vpop.f32.mrf.mxu1 }
 0x3f9   :  { %v307_v58 = vmul.f32 0.25, %v302_v56  ;;  %v310_v59 = vsel %vm261_vm2, %v308_v55, -inf }
 0x3fa   :  { %311 = vmax.xlane.f32.xlu0 %v310_v59  ;;  %v1880_v60 = vpop.f32.mrf.mxu1 }
 0x3fb   :  { %v309_v61 = vadd.f32 %v307_v58, %v2382_v57 }
 0x3fc   :  { %v421_v62 = vpop.f32.mrf.mxu0 }
 0x3fd   :  { %v428_v63 = vmul.f32 0.25, %v421_v62  ;;  %v313_v0 = vsel %vm261_vm2, %v309_v61, -inf }
 0x3fe   :  { %314 = vmax.xlane.f32.xlu0 %v313_v0  ;;  %v1891_v1 = vpop.f32.mrf.mxu0 }
 0x3ff   :  { %v430_v2 = vadd.f32 %v428_v63, %v2379_v52 }
 0x400   :  { %v424_v3 = vpop.f32.mrf.mxu0 }
 0x401   :  { %v429_v4 = vmul.f32 0.25, %v424_v3  ;;  %v432_v5 = vsel %vm261_vm2, %v430_v2, -inf  ;;  %v1745_v3 = vld [vmem:[#allocation7 + $0x5] ss:$0 sm:$0xff] }
 0x402   :  { %433 = vmax.xlane.f32.xlu0 %v432_v5  ;;  %v1892_v6 = vpop.f32.mrf.mxu0 }
 0x403   :  { %v431_v7 = vadd.f32 %v429_v4, %v2382_v57 }
 0x405   :  { %v435_v8 = vsel %vm261_vm2, %v431_v7, -inf }
 0x406   :  { %436 = vmax.xlane.f32.xlu0 %v435_v8 }
 0x483   :  { %v312_v9 = vpop.xlane.xlu0 %311 }
 0x484   :  { %v316_v10 = vsub.f32 %v308_v55, %v312_v9 }
 0x486   :  { %v318_v11 = vmul.f32 1.442695, %v316_v10 }
 0x487   :  { %v315_v12 = vpop.xlane.xlu0 %314 }
 0x488   :  { %2054 = vpow2.f32 %v318_v11  ;;  %v317_v13 = vsub.f32 %v309_v61, %v315_v12 }
 0x48a   :  { %v320_v14 = vmul.f32 1.442695, %v317_v13 }
 0x48b   :  { %v434_v20 = vpop.xlane.xlu0 %433 }
 0x48c   :  { %2056 = vpow2.f32 %v320_v14  ;;  %v438_v21 = vsub.f32 %v430_v2, %v434_v20 }
 0x48e   :  { %v440_v23 = vmul.f32 1.442695, %v438_v21 }
 0x48f   :  { %v437_v22 = vpop.xlane.xlu0 %436 }
 0x490   :  { %v439_v24 = vsub.f32 %v431_v7, %v437_v22  ;;  %2058 = vpow2.f32 %v440_v23 }
 0x492   :  { %v442_v25 = vmul.f32 1.442695, %v439_v24 }
 0x494   :  { %2060 = vpow2.f32 %v442_v25  ;;  %v2031_v25 = vld [vmem:[%s2586_s5] sm:$0xff]  }
 0x495   :  { %v2055_v16 = vpop.eup %2054 }
 0x496   :  { %v322_v17 = vsel %vm261_vm2, %v2055_v16, 0.0 }
 0x497   :  { %323 = vadd.xlane.f32.xlu0 %v322_v17 }
 0x499   :  { %v2057_v18 = vpop.eup %2056 }
 0x49a   :  { %v325_v19 = vsel %vm261_vm2, %v2057_v18, 0.0 }
 0x49b   :  { %326 = vadd.xlane.f32.xlu1 %v325_v19 }
 0x49d   :  { %v2059_v26 = vpop.eup %2058 }
 0x49e   :  { %v444_v27 = vsel %vm261_vm2, %v2059_v26, 0.0 }
 0x4a1   :  { %v2061_v28 = vpop.eup %2060 }
 0x4a2   :  { %v447_v29 = vsel %vm261_vm2, %v2061_v28, 0.0 }
 0x4ad   :  { %334 = vrot.lane.b32.xlu0 %v2366_v41, %s2246_s19 }
 0x4cc   :  { %445 = vadd.xlane.f32.xlu0 %v444_v27 }
 0x4d0   :  { %448 = vadd.xlane.f32.xlu0 %v447_v29 }
 0x4e6   :  { %455 = vrot.lane.b32.xlu0 %v2366_v41, %s2255_s21 }
 0x520   :  { %v324_v30 = vpop.xlane.xlu0 %323 }
 0x521   :  { %2062 = vrcp.f32 %v324_v30 }
 0x524   :  { %v327_v33 = vpop.xlane.xlu1 %326  ;;  %v335_v34 = vpop.permute.xlu0 %334 }
 0x525   :  { %2064 = vrcp.f32 %v327_v33  ;;  %1882 = vmatpush3.bf16.msra.mxu1 %v335_v34 }
 0x526   :  { %1893 = vmatprep.subr.bf16.mxu1 %v2251_v15 }
 0x52e   :  { %v2063_v35 = vpop.eup %2062 }
 0x52f   :  { %v330_v37 = vmul.f32 %v2063_v35, %v2055_v16 }
 0x532   :  { %v2065_v36 = vpop.eup %2064 }
 0x533   :  { %v331_v38 = vmul.f32 %v2065_v36, %v2057_v18  ;;  %v1746_v36 = vld [vmem:[#allocation7 + $0x6] ss:$0 sm:$0xff] }
 0x535   :  { %v332_v39 = vpack.c.bf16 %v331_v38, %v330_v37 }
 0x537   :  { %1884 = vmatmul.mubr.msk.bf16.vlgmr.msra.gmra.mxu1 %vm261_vm2, %v332_v39 }
 0x538   :  { %1895 = vmatprep.mubr.msk.bf16.mxu1 %vm2252_vm1, %v2251_v15 }
 0x555   :  { %v446_v40 = vpop.xlane.xlu0 %445 }
 0x556   :  { %2066 = vrcp.f32 %v446_v40  ;;  %v1747_v40 = vld [vmem:[#allocation7 + $0x7] ss:$0 sm:$0xff] }
 0x559   :  { %v449_v41 = vpop.xlane.xlu0 %448 }
 0x55a   :  { %2068 = vrcp.f32 %v449_v41 }
 0x55d   :  { %v456_v42 = vpop.permute.xlu0 %455 }
 0x55e   :  { %1894 = vmatpush3.bf16.msra.mxu1 %v456_v42 }
 0x55f   :  { %1905 = vmatprep.subr.bf16.mxu1 %v2251_v15 }
 0x563   :  { %v2067_v43 = vpop.eup %2066 }
 0x564   :  { %v452_v45 = vmul.f32 %v2067_v43, %v2059_v26 }
 0x567   :  { %v2069_v44 = vpop.eup %2068 }
 0x568   :  { %v453_v46 = vmul.f32 %v2069_v44, %v2061_v28 }
 0x56a   :  { %v454_v47 = vpack.c.bf16 %v453_v46, %v452_v45  ;;  %v2032_v45 = vld [vmem:[%s2587_s6 + $0x18] sm:$0xff]   ;;  %v2033_v46 = vld [vmem:[%s2587_s6 + $0x10] sm:$0xff]  }
 0x56c   :  { %1896 = vmatmul.mubr.msk.bf16.vlgmr.msra.gmra.mxu1 %vm261_vm2, %v454_v47  ;;  %v2034_v47 = vld [vmem:[%s2587_s6 + $0x8] sm:$0xff]  }
 0x56d   :  { %1907 = vmatprep.mubr.msk.bf16.mxu1 %vm2252_vm1, %v2251_v15  ;;  %1906 = vmatpush3.bf16.msra.mxu1 %v2028_v48  ;;  %v2035_v48 = vld [vmem:[%s2587_s6] sm:$0xff]  }
 0x56e   :  { %1919 = vmatprep.subr.bf16.mxu1 %v2251_v15 }
 0x5f7   :  { %v374_v50 = vpop.f32.mrf.mxu1 }
 0x5f9   :  { %v1885_v51 = vpop.f32.mrf.mxu1 }
 0x5fb   :  { %v377_v53 = vpop.f32.mrf.mxu1 }
 0x5fc   :  { %v381_v54 = vpack.c.bf16 %v377_v53, %v374_v50 }
 0x5fd   :  { %v1886_v55 = vpop.f32.mrf.mxu1 }
 0x5fe   :  { %1908 = vmatmul.mubr.msk.bf16.vlgmr.msra.gmra.mxu1 %vm261_vm2, %v381_v54 }
 0x5ff   :  { %1927 = vmatprep.mubr.msk.bf16.mxu1 %vm2252_vm1, %v2251_v15  ;;  %1920 = vmatpush3.bf16.msra.mxu1 %v2032_v45  ;;  %v1758_v45 = vld [vmem:[#allocation7 + $0xa] ss:$0 sm:$0xff] }
 0x600   :  { %1921 = vmatprep.subr.bf16.mxu1 %v2251_v15 }
 0x603   :  { %1922 = vmatpush3.bf16.msra.mxu1 %v2033_v46 }
 0x604   :  { %1923 = vmatprep.subr.bf16.mxu1 %v2251_v15 }
 0x607   :  { %1924 = vmatpush3.bf16.msra.mxu1 %v2034_v47 }
 0x608   :  { %1925 = vmatprep.subr.bf16.mxu1 %v2251_v15 }
 0x60b   :  { %1926 = vmatpush3.bf16.msra.mxu1 %v2035_v48 }
 0x60c   :  { %1945 = vmatprep.subr.bf16.mxu1 %v2251_v15 }
 0x62c   :  { %v495_v56 = vpop.f32.mrf.mxu1 }
 0x62e   :  { %v1897_v58 = vpop.f32.mrf.mxu1 }
 0x630   :  { %v498_v59 = vpop.f32.mrf.mxu1 }
 0x631   :  { %v502_v60 = vpack.c.bf16 %v498_v59, %v495_v56 }
 0x632   :  { %v1898_v61 = vpop.f32.mrf.mxu1 }
 0x633   :  { %1902 = vmatmul.mubr.msk.bf16.vlgmr.msra.gmra.mxu0 %vm261_vm2, %v502_v60 }
 0x634   :  { %1915 = vmatprep.mubr.msk.bf16.mxu0 %vm2252_vm1, %v2251_v15 }
 0x6be   :  { %v596_v62 = vpop.f32.mrf.mxu1 }
 0x6c0   :  { %v1909_v63 = vpop.f32.mrf.mxu1 }
 0x6c2   :  { %v599_v0 = vpop.f32.mrf.mxu1 }
 0x6c4   :  { %v1910_v1 = vpop.f32.mrf.mxu1 }
 0x6f3   :  { %v546_v2 = vpop.f32.mrf.mxu0 }
 0x6f4   :  { %v597_v4 = vadd.f32 %v596_v62, %v546_v2 }
 0x6f5   :  { %v1903_v5 = vpop.f32.mrf.mxu0 }
 0x6f6   :  { %v608_v6 = vadd.f32 %v1745_v3, %v597_v4 }
 0x6f7   :  { %v549_v7 = vpop.f32.mrf.mxu0 }
 0x6f8   :  { %v600_v8 = vadd.f32 %v599_v0, %v549_v7  ;;  %v610_v9 = vadd.f32 %v608_v6, %v2355_v31 }
 0x6f9   :  { %v1904_v10 = vpop.f32.mrf.mxu0 }
 0x6fa   :  { %v609_v11 = vadd.f32 %v1745_v3, %v600_v8  ;;  %v614_v12 = vsel %vm106_vm0, %v610_v9, 0.0 }
 0x6fb   :  { %615 = vadd.xlane.f32.xlu0 %v614_v12 }
 0x6fc   :  { %v611_v13 = vadd.f32 %v609_v11, %v2357_v32  ;;  %v2030_v32 = vld [vmem:[%s2586_s5 + $0x8] sm:$0xff]  }
 0x6fd   :  { %1912 = vmatpush3.bf16.msra.mxu0 %v2030_v32 }
 0x6fe   :  { %v617_v14 = vsel %vm106_vm0, %v611_v13, 0.0  ;;  %1913 = vmatprep.subr.bf16.mxu0 %v2251_v15 }
 0x6ff   :  { %618 = vadd.xlane.f32.xlu1 %v617_v14 }
 0x701   :  { %1914 = vmatpush3.bf16.msra.mxu0 %v2031_v25 }
 0x702   :  { %1931 = vmatprep.subr.bf16.mxu0 %v2251_v15 }
 0x784   :  { %v616_v16 = vpop.xlane.xlu0 %615 }
 0x785   :  { %v620_v17 = vmul.f32 0.03125, %v616_v16 }
 0x787   :  { %v622_v18 = vsub.f32 %v610_v9, %v620_v17 }
 0x788   :  { %v619_v19 = vpop.xlane.xlu1 %618 }
 0x789   :  { %v621_v20 = vmul.f32 0.03125, %v619_v19  ;;  %v624_v21 = vmul.f32 %v622_v18, %v622_v18 }
 0x78b   :  { %v623_v22 = vsub.f32 %v611_v13, %v621_v20  ;;  %v626_v23 = vsel %vm106_vm0, %v624_v21, 0.0  ;;  %v1752_v13 = vld [vmem:[#allocation7 + $0x9] ss:$0 sm:$0xff] }
 0x78c   :  { %627 = vadd.xlane.f32.xlu1 %v626_v23 }
 0x78d   :  { %v625_v31 = vmul.f32 %v623_v22, %v623_v22 }
 0x78f   :  { %v629_v24 = vsel %vm106_vm0, %v625_v31, 0.0 }
 0x790   :  { %630 = vadd.xlane.f32.xlu1 %v629_v24 }
 0x815   :  { %v628_v26 = vpop.xlane.xlu1 %627 }
 0x816   :  { %v632_v27 = vmul.f32 0.03125, %v628_v26 }
 0x818   :  { %v634_v28 = vadd.f32 1e-12, %v632_v27 }
 0x819   :  { %v631_v29 = vpop.xlane.xlu1 %630 }
 0x81a   :  { %2070 = vrsqrt.f32 %v634_v28  ;;  %v633_v30 = vmul.f32 0.03125, %v631_v29 }
 0x81c   :  { %v635_v33 = vadd.f32 1e-12, %v633_v30 }
 0x81e   :  { %2072 = vrsqrt.f32 %v635_v33 }
 0x827   :  { %v2071_v34 = vpop.eup %2070 }
 0x828   :  { %v638_v35 = vmul.f32 %v2071_v34, %v622_v18 }
 0x82a   :  { %v644_v39 = vmul.f32 %v1746_v36, %v638_v35  ;;  %v2036_v35 = vld [vmem:[%s2584_s3 + $0x18] sm:$0xff]  }
 0x82b   :  { %v2073_v37 = vpop.eup %2072 }
 0x82c   :  { %v639_v38 = vmul.f32 %v2073_v37, %v623_v22  ;;  %v650_v42 = vadd.f32 %v1747_v40, %v644_v39 }
 0x82e   :  { %v645_v41 = vmul.f32 %v1746_v36, %v639_v38  ;;  %v2037_v36 = vld [vmem:[%s2584_s3 + $0x10] sm:$0xff]  }
 0x830   :  { %v651_v43 = vadd.f32 %v1747_v40, %v645_v41 }
 0x832   :  { %v652_v44 = vpack.c.bf16 %v651_v43, %v650_v42 }
 0x834   :  { %1916 = vmatmul.mubr.msk.bf16.vlgmr.msra.gmra.mxu0 %vm106_vm0, %v652_v44 }
 0x835   :  { %1935 = vmatprep.mubr.msk.bf16.mxu0 %vm2252_vm1, %v2251_v15  ;;  %1932 = vmatpush3.bf16.msra.mxu0 %v2036_v35 }
 0x836   :  { %1933 = vmatprep.subr.bf16.mxu0 %v2251_v15 }
 0x839   :  { %1934 = vmatpush3.bf16.msra.mxu0 %v2037_v36 }
 0x83a   :  { %1939 = vmatprep.subr.bf16.mxu0 %v2251_v15 }
 0x8f4   :  { %v711_v50 = vpop.f32.mrf.mxu0 }
 0x8f5   :  { %v712_v51 = vadd.f32 %v1748_v49, %v711_v50 }
 0x8f6   :  { %v1917_v53 = vpop.f32.mrf.mxu0 }
 0x8f7   :  { %v718_v54 = vmul.f32 %v712_v51, %v712_v51 }
 0x8f8   :  { %v714_v55 = vpop.f32.mrf.mxu0 }
 0x8f9   :  { %v720_v56 = vmul.f32 %v718_v54, %v712_v51  ;;  %v715_v58 = vadd.f32 %v1748_v49, %v714_v55  ;;  %v1759_v49 = vld [vmem:[#allocation7 + $0xb] ss:$0 sm:$0xff]  ;;  %v1764_v55 = vld [vmem:[#allocation7 + $0xc] ss:$0 sm:$0xff] }
 0x8fa   :  { %v1918_v59 = vpop.f32.mrf.mxu0 }
 0x8fb   :  { %v722_v60 = vmul.f32 0.044715, %v720_v56  ;;  %v719_v61 = vmul.f32 %v715_v58, %v715_v58 }
 0x8fd   :  { %v724_v62 = vadd.f32 %v722_v60, %v712_v51  ;;  %v721_v63 = vmul.f32 %v719_v61, %v715_v58 }
 0x8ff   :  { %v726_v0 = vmul.f32 0.7978846, %v724_v62  ;;  %v723_v1 = vmul.f32 0.044715, %v721_v63 }
 0x901   :  { %2074 = vtanh.f32 %v726_v0  ;;  %v725_v2 = vadd.f32 %v723_v1, %v715_v58 }
 0x903   :  { %v727_v3 = vmul.f32 0.7978846, %v725_v2 }
 0x905   :  { %2076 = vtanh.f32 %v727_v3 }
 0x90e   :  { %v2075_v4 = vpop.eup %2074 }
 0x90f   :  { %v730_v5 = vadd.f32 1.0, %v2075_v4 }
 0x911   :  { %v732_v7 = vmul.f32 0.5, %v730_v5 }
 0x912   :  { %v2077_v6 = vpop.eup %2076 }
 0x913   :  { %v731_v8 = vadd.f32 1.0, %v2077_v6  ;;  %v734_v10 = vmul.f32 %v732_v7, %v712_v51 }
 0x915   :  { %v733_v9 = vmul.f32 0.5, %v731_v8 }
 0x917   :  { %v735_v11 = vmul.f32 %v733_v9, %v715_v58 }
 0x919   :  { %v736_v12 = vpack.c.bf16 %v735_v11, %v734_v10 }
 0x91b   :  { %1928 = vmatmul.mubr.msk.bf16.vlgmr.msra.gmra.mxu1 %vm774_vm3, %v736_v12 }
 0x91c   :  { %1947 = vmatprep.mubr.msk.bf16.mxu1 %vm2252_vm1, %v2251_v15 }
 0x9db   :  { %v812_v14 = vpop.f32.mrf.mxu1 }
 0x9dc   :  { %v813_v16 = vadd.f32 %v1752_v13, %v812_v14 }
 0x9dd   :  { %v1929_v17 = vpop.f32.mrf.mxu1 }
 0x9de   :  { %v819_v18 = vadd.f32 %v813_v16, %v650_v42 }
 0x9df   :  { %v815_v19 = vpop.f32.mrf.mxu1 }
 0x9e0   :  { %v816_v20 = vadd.f32 %v1752_v13, %v815_v19  ;;  %v823_v21 = vsel %vm106_vm0, %v819_v18, 0.0 }
 0x9e1   :  { %824 = vadd.xlane.f32.xlu1 %v823_v21  ;;  %v1930_v22 = vpop.f32.mrf.mxu1 }
 0x9e2   :  { %v820_v23 = vadd.f32 %v816_v20, %v651_v43 }
 0x9e4   :  { %v826_v31 = vsel %vm106_vm0, %v820_v23, 0.0 }
 0x9e5   :  { %827 = vadd.xlane.f32.xlu1 %v826_v31 }
 0xa6a   :  { %v825_v24 = vpop.xlane.xlu1 %824 }
 0xa6b   :  { %v829_v32 = vmul.f32 0.03125, %v825_v24 }
 0xa6d   :  { %v831_v25 = vsub.f32 %v819_v18, %v829_v32 }
 0xa6e   :  { %v828_v26 = vpop.xlane.xlu1 %827 }
 0xa6f   :  { %v830_v27 = vmul.f32 0.03125, %v828_v26  ;;  %v833_v28 = vmul.f32 %v831_v25, %v831_v25 }
 0xa71   :  { %v832_v29 = vsub.f32 %v820_v23, %v830_v27  ;;  %v835_v30 = vsel %vm106_vm0, %v833_v28, 0.0 }
 0xa72   :  { %836 = vadd.xlane.f32.xlu1 %v835_v30 }
 0xa73   :  { %v834_v33 = vmul.f32 %v832_v29, %v832_v29 }
 0xa75   :  { %v838_v34 = vsel %vm106_vm0, %v834_v33, 0.0 }
 0xa76   :  { %839 = vadd.xlane.f32.xlu0 %v838_v34 }
 0xafb   :  { %v837_v37 = vpop.xlane.xlu1 %836 }
 0xafc   :  { %v841_v38 = vmul.f32 0.03125, %v837_v37 }
 0xafe   :  { %v843_v39 = vadd.f32 1e-12, %v841_v38 }
 0xaff   :  { %v840_v40 = vpop.xlane.xlu0 %839 }
 0xb00   :  { %2078 = vrsqrt.f32 %v843_v39  ;;  %v842_v41 = vmul.f32 0.03125, %v840_v40 }
 0xb02   :  { %v844_v42 = vadd.f32 1e-12, %v842_v41 }
 0xb04   :  { %2080 = vrsqrt.f32 %v844_v42 }
 0xb0d   :  { %v2079_v43 = vpop.eup %2078 }
 0xb0e   :  { %v847_v44 = vmul.f32 %v2079_v43, %v831_v25 }
 0xb10   :  { %v853_v48 = vmul.f32 %v1758_v45, %v847_v44 }
 0xb11   :  { %v2081_v46 = vpop.eup %2080 }
 0xb12   :  { %v848_v47 = vmul.f32 %v2081_v46, %v832_v29  ;;  %v2469_v51 = vadd.f32 %v1759_v49, %v853_v48 }
 0xb14   :  { %v854_v50 = vmul.f32 %v1758_v45, %v848_v47 }
 0xb16   :  { %v2471_v53 = vadd.f32 %v1759_v49, %v854_v50 }
 0xb18   :  { %v861_v54 = vpack.c.bf16 %v2471_v53, %v2469_v51 }
 0xb1a   :  { %1936 = vmatmul.mubr.msk.bf16.vlgmr.msra.gmra.mxu0 %vm106_vm0, %v861_v54 }
 0xb1b   :  { %1941 = vmatprep.mubr.msk.bf16.mxu0 %vm2252_vm1, %v2251_v15 }
 0xbda   :  { %v921_v56 = vpop.f32.mrf.mxu0 }
 0xbdb   :  { %v922_v58 = vadd.f32 %v1764_v55, %v921_v56 }
 0xbdc   :  { %v1937_v59 = vpop.f32.mrf.mxu0 }
 0xbdd   :  { %930 = vrot.lane.b32.xlu1 %v922_v58, %s2253_s18 }
 0xbde   :  { %v924_v60 = vpop.f32.mrf.mxu0 }
 0xbdf   :  { %v925_v61 = vadd.f32 %v1764_v55, %v924_v60 }
 0xbe0   :  { %v1938_v62 = vpop.f32.mrf.mxu0 }
 0xbe1   :  { %v2479_v63 = vpack.c.bf16 %v925_v61, %v922_v58  ;;  %932 = vrot.lane.b32.xlu0 %v925_v61, %s2253_s18 }
 0xbe3   :  { %1096 = vrot.lane.b32.xlu1 %v2479_v63, %s2254_s20 }
 0xc4f   :  { %v931_v0 = vpop.permute.xlu1 %930 }
 0xc50   :  { %936 = vxpose.xlu1.b32.start [1/2] (short) (narrow) %v931_v0, 32 }
 0xc53   :  { %v933_v1 = vpop.permute.xlu0 %932 }
 0xc54   :  { %937 = vxpose.xlu1.b32.end [2/2] (short) (narrow) %v933_v1, 32 }
 0xc55   :  { %v1097_v2 = vpop.permute.xlu1 %1096 }
 0xccc   :  { %v952_v3 = vpop.trf.xlu1 }
 0xcd0   :  { %v953_v4 = vpop.trf.xlu1 }
 0xcd1   :  { %v968_v5 = vpack.c.bf16 %v953_v4, %v952_v3  ;;  %v2038_v4 = vld [vmem:[%s2585_s4 + $0x10] sm:$0xff]  }
 0xcd3   :  { %1940 = vmatpush3.bf16.msra.mxu0 %v968_v5  ;;  %v2039_v5 = vld [vmem:[%s2585_s4 + $0x18] sm:$0xff]  }
 0xcd4   :  { %v954_v6 = vpop.trf.xlu1  ;;  %1951 = vmatprep.subr.bf16.mxu0 %v2251_v15 }
 0xcd6   :  { %1942 = vmatmul.mubr.msk.bf16.vlgmr.msra.gmra.mxu0 %vm261_vm2, %v2479_v63 }
 0xcd7   :  { %1953 = vmatprep.mubr.msk.bf16.mxu0 %vm2252_vm1, %v2251_v15 }
 0xcd8   :  { %v955_v7 = vpop.trf.xlu1 }
 0xcd9   :  { %v969_v8 = vpack.c.bf16 %v955_v7, %v954_v6 }
 0xcdb   :  { %1952 = vmatpush3.bf16.msra.mxu0 %v969_v8 }
 0xcdc   :  { %1963 = vmatprep.subr.bf16.mxu0 %v2251_v15 }
 0xcde   :  { %1954 = vmatmul.mubr.msk.bf16.vlgmr.msra.gmra.mxu0 %vm261_vm2, %v1097_v2 }
 0xcdf   :  { %1965 = vmatprep.mubr.msk.bf16.mxu0 %vm2252_vm1, %v2251_v15  ;;  %1964 = vmatpush3.bf16.msra.mxu0 %v2039_v5 }
 0xce0   :  { %1975 = vmatprep.subr.bf16.mxu0 %v2251_v15 }
 0xd96   :  { %v1013_v9 = vpop.f32.mrf.mxu0 }
 0xd97   :  { %v1020_v10 = vmul.f32 0.25, %v1013_v9 }
 0xd98   :  { %v1943_v11 = vpop.f32.mrf.mxu0 }
 0xd99   :  { %v1022_v12 = vadd.f32 %v1020_v10, %v2379_v52 }
 0xd9a   :  { %v1016_v13 = vpop.f32.mrf.mxu0 }
 0xd9b   :  { %v1021_v14 = vmul.f32 0.25, %v1016_v13  ;;  %v1024_v16 = vsel %vm261_vm2, %v1022_v12, -inf }
 0xd9c   :  { %1025 = vmax.xlane.f32.xlu0 %v1024_v16  ;;  %v1944_v17 = vpop.f32.mrf.mxu0 }
 0xd9d   :  { %v1023_v18 = vadd.f32 %v1021_v14, %v2382_v57 }
 0xd9e   :  { %v1135_v19 = vpop.f32.mrf.mxu0 }
 0xd9f   :  { %v1142_v20 = vmul.f32 0.25, %v1135_v19  ;;  %v1027_v21 = vsel %vm261_vm2, %v1023_v18, -inf }
 0xda0   :  { %1028 = vmax.xlane.f32.xlu0 %v1027_v21  ;;  %v1955_v22 = vpop.f32.mrf.mxu0 }
 0xda1   :  { %v1144_v23 = vadd.f32 %v1142_v20, %v2379_v52  ;;  %v1780_v22 = vld [vmem:[#allocation7 + $0xd] ss:$0 sm:$0xff] }
 0xda2   :  { %v1138_v31 = vpop.f32.mrf.mxu0 }
 0xda3   :  { %v1143_v24 = vmul.f32 0.25, %v1138_v31  ;;  %v1146_v32 = vsel %vm261_vm2, %v1144_v23, -inf }
 0xda4   :  { %1147 = vmax.xlane.f32.xlu0 %v1146_v32  ;;  %v1956_v25 = vpop.f32.mrf.mxu0 }
 0xda5   :  { %v1145_v26 = vadd.f32 %v1143_v24, %v2382_v57 }
 0xda7   :  { %v1149_v27 = vsel %vm261_vm2, %v1145_v26, -inf }
 0xda8   :  { %1150 = vmax.xlane.f32.xlu0 %v1149_v27 }
 0xe25   :  { %v1026_v28 = vpop.xlane.xlu0 %1025 }
 0xe26   :  { %v1030_v29 = vsub.f32 %v1022_v12, %v1026_v28 }
 0xe28   :  { %v1032_v30 = vmul.f32 1.442695, %v1030_v29 }
 0xe29   :  { %v1029_v33 = vpop.xlane.xlu0 %1028 }
 0xe2a   :  { %2082 = vpow2.f32 %v1032_v30  ;;  %v1031_v34 = vsub.f32 %v1023_v18, %v1029_v33 }
 0xe2c   :  { %v1034_v35 = vmul.f32 1.442695, %v1031_v34 }
 0xe2d   :  { %v1148_v57 = vpop.xlane.xlu0 %1147 }
 0xe2e   :  { %2084 = vpow2.f32 %v1034_v35  ;;  %v1152_v39 = vsub.f32 %v1144_v23, %v1148_v57 }
 0xe30   :  { %v1154_v41 = vmul.f32 1.442695, %v1152_v39 }
 0xe31   :  { %v1151_v40 = vpop.xlane.xlu0 %1150 }
 0xe32   :  { %v1153_v42 = vsub.f32 %v1145_v26, %v1151_v40  ;;  %2086 = vpow2.f32 %v1154_v41  ;;  %v2041_v41 = vld [vmem:[%s2586_s5 + $0x10] sm:$0xff]  }
 0xe34   :  { %v1156_v43 = vmul.f32 1.442695, %v1153_v42 }
 0xe36   :  { %2088 = vpow2.f32 %v1156_v43 }
 0xe37   :  { %v2083_v52 = vpop.eup %2082 }
 0xe38   :  { %v1036_v36 = vsel %vm261_vm2, %v2083_v52, 0.0 }
 0xe39   :  { %1037 = vadd.xlane.f32.xlu0 %v1036_v36 }
 0xe3b   :  { %v2085_v37 = vpop.eup %2084 }
 0xe3c   :  { %v1039_v38 = vsel %vm261_vm2, %v2085_v37, 0.0 }
 0xe3d   :  { %1040 = vadd.xlane.f32.xlu1 %v1039_v38 }
 0xe3f   :  { %v2087_v44 = vpop.eup %2086 }
 0xe40   :  { %v1158_v45 = vsel %vm261_vm2, %v2087_v44, 0.0 }
 0xe43   :  { %v2089_v46 = vpop.eup %2088 }
 0xe44   :  { %v1161_v47 = vsel %vm261_vm2, %v2089_v46, 0.0 }
 0xe4f   :  { %1048 = vrot.lane.b32.xlu0 %v2479_v63, %s2246_s19 }
 0xe6e   :  { %1159 = vadd.xlane.f32.xlu0 %v1158_v45 }
 0xe72   :  { %1162 = vadd.xlane.f32.xlu0 %v1161_v47 }
 0xe88   :  { %1169 = vrot.lane.b32.xlu0 %v2479_v63, %s2255_s21 }
 0xec2   :  { %v1038_v48 = vpop.xlane.xlu0 %1037 }
 0xec3   :  { %2090 = vrcp.f32 %v1038_v48 }
 0xec6   :  { %v1041_v49 = vpop.xlane.xlu1 %1040  ;;  %v1049_v50 = vpop.permute.xlu0 %1048 }
 0xec7   :  { %2092 = vrcp.f32 %v1041_v49  ;;  %1946 = vmatpush3.bf16.msra.mxu1 %v1049_v50  ;;  %v1781_v50 = vld [vmem:[#allocation7 + $0xe] ss:$0 sm:$0xff] }
 0xec8   :  { %1957 = vmatprep.subr.bf16.mxu1 %v2251_v15 }
 0xed0   :  { %v2091_v54 = vpop.eup %2090 }
 0xed1   :  { %v1044_v56 = vmul.f32 %v2091_v54, %v2083_v52 }
 0xed4   :  { %v2093_v55 = vpop.eup %2092 }
 0xed5   :  { %v1045_v58 = vmul.f32 %v2093_v55, %v2085_v37 }
 0xed7   :  { %v1046_v59 = vpack.c.bf16 %v1045_v58, %v1044_v56  ;;  %v1782_v58 = vld [vmem:[#allocation7 + $0xf] ss:$0 sm:$0xff] }
 0xed9   :  { %1948 = vmatmul.mubr.msk.bf16.vlgmr.msra.gmra.mxu1 %vm261_vm2, %v1046_v59 }
 0xeda   :  { %1959 = vmatprep.mubr.msk.bf16.mxu1 %vm2252_vm1, %v2251_v15 }
 0xef7   :  { %v1160_v60 = vpop.xlane.xlu0 %1159 }
 0xef8   :  { %2094 = vrcp.f32 %v1160_v60 }
 0xefb   :  { %v1163_v61 = vpop.xlane.xlu0 %1162 }
 0xefc   :  { %2096 = vrcp.f32 %v1163_v61 }
 0xeff   :  { %v1170_v62 = vpop.permute.xlu0 %1169 }
 0xf00   :  { %1958 = vmatpush3.bf16.msra.mxu1 %v1170_v62 }
 0xf01   :  { %1969 = vmatprep.subr.bf16.mxu1 %v2251_v15 }
 0xf05   :  { %v2095_v63 = vpop.eup %2094 }
 0xf06   :  { %v1166_v1 = vmul.f32 %v2095_v63, %v2087_v44  ;;  %v2042_v63 = vld [vmem:[%s2587_s6 + $0x38] sm:$0xff]  }
 0xf09   :  { %v2097_v0 = vpop.eup %2096 }
 0xf0a   :  { %v1167_v2 = vmul.f32 %v2097_v0, %v2089_v46  ;;  %v2043_v0 = vld [vmem:[%s2587_s6 + $0x30] sm:$0xff]  }
 0xf0c   :  { %v1168_v3 = vpack.c.bf16 %v1167_v2, %v1166_v1  ;;  %v2044_v1 = vld [vmem:[%s2587_s6 + $0x28] sm:$0xff]   ;;  %v2045_v2 = vld [vmem:[%s2587_s6 + $0x20] sm:$0xff]   ;;  %s2256_s6 = smov [#allocation11]  }
 0xf0d   :  { %s1717_s29 = sshll.u32 %s2256_s6, 4  ;;  %s1718_s29 = int_to_ptr.vmem [resolvable:$true] %s1717_s29 }
 0xf0e   :  { %1960 = vmatmul.mubr.msk.bf16.vlgmr.msra.gmra.mxu1 %vm261_vm2, %v1168_v3  ;;  %v1787_v3 = vld [vmem:[#allocation7 + $0x10] ss:$0 sm:$0xff]  ;;  %s2214_s30 = scalar_lea.vmem %s1718_s29, 256  ;;  %p2219_p12 = scmp.lt.s32.totalorder %s1718_s29, %s1718_s29 }
 0xf0f   :  { %1971 = vmatprep.mubr.msk.bf16.mxu1 %vm2252_vm1, %v2251_v15  ;;  %1970 = vmatpush3.bf16.msra.mxu1 %v2038_v4  ;;  %p2215_p11 = scmp.ne.s32.totalorder %s1718_s29, %s2214_s30  ;;  %p2220_p13 = scmp.lt.s32.totalorder %s2214_s30, %s2214_s30 }
 0xf10   :  { %1983 = vmatprep.subr.bf16.mxu1 %v2251_v15 }
 0xf11   :  { %p2221_p0 = por %p2220_p13, %p2219_p12 }
 0xf13   :  { %p2222_p1 = pnand %p2221_p0, %p2215_p11 }
 0xf99   :  { %v1088_v6 = vpop.f32.mrf.mxu1 }
 0xf9b   :  { %v1949_v7 = vpop.f32.mrf.mxu1 }
 0xf9d   :  { %v1091_v8 = vpop.f32.mrf.mxu1 }
 0xf9e   :  { %v1095_v9 = vpack.c.bf16 %v1091_v8, %v1088_v6 }
 0xf9f   :  { %v1950_v10 = vpop.f32.mrf.mxu1 }
 0xfa0   :  { %1972 = vmatmul.mubr.msk.bf16.vlgmr.msra.gmra.mxu1 %vm261_vm2, %v1095_v9 }
 0xfa1   :  { %1991 = vmatprep.mubr.msk.bf16.mxu1 %vm2252_vm1, %v2251_v15  ;;  %1984 = vmatpush3.bf16.msra.mxu1 %v2042_v63 }
 0xfa2   :  { %1985 = vmatprep.subr.bf16.mxu1 %v2251_v15 }
 0xfa5   :  { %1986 = vmatpush3.bf16.msra.mxu1 %v2043_v0 }
 0xfa6   :  { %1987 = vmatprep.subr.bf16.mxu1 %v2251_v15 }
 0xfa9   :  { %1988 = vmatpush3.bf16.msra.mxu1 %v2044_v1  ;;  %v1806_v1 = vld [vmem:[#allocation7 + $0x13] ss:$0 sm:$0xff] }
 0xfaa   :  { %1989 = vmatprep.subr.bf16.mxu1 %v2251_v15 }
 0xfad   :  { %1990 = vmatpush3.bf16.msra.mxu1 %v2045_v2 }
 0xfce   :  { %v1209_v11 = vpop.f32.mrf.mxu1 }
 0xfd0   :  { %v1961_v12 = vpop.f32.mrf.mxu1 }
 0xfd2   :  { %v1212_v13 = vpop.f32.mrf.mxu1 }
 0xfd3   :  { %v1216_v14 = vpack.c.bf16 %v1212_v13, %v1209_v11 }
 0xfd4   :  { %v1962_v16 = vpop.f32.mrf.mxu1 }
 0xfd5   :  { %1966 = vmatmul.mubr.msk.bf16.vlgmr.msra.gmra.mxu0 %vm261_vm2, %v1216_v14 }
 0xfd6   :  { %1979 = vmatprep.mubr.msk.bf16.mxu0 %vm2252_vm1, %v2251_v15 }
0x1060   :  { %v1310_v17 = vpop.f32.mrf.mxu1 }
0x1062   :  { %v1973_v18 = vpop.f32.mrf.mxu1 }
0x1064   :  { %v1313_v19 = vpop.f32.mrf.mxu1 }
0x1066   :  { %v1974_v20 = vpop.f32.mrf.mxu1 }
0x1095   :  { %v1260_v21 = vpop.f32.mrf.mxu0 }
0x1096   :  { %v1311_v23 = vadd.f32 %v1310_v17, %v1260_v21 }
0x1097   :  { %v1967_v31 = vpop.f32.mrf.mxu0 }
0x1098   :  { %v1322_v24 = vadd.f32 %v1780_v22, %v1311_v23 }
0x1099   :  { %v1263_v32 = vpop.f32.mrf.mxu0 }
0x109a   :  { %v1314_v25 = vadd.f32 %v1313_v19, %v1263_v32  ;;  %v1324_v26 = vadd.f32 %v1322_v24, %v2469_v51 }
0x109b   :  { %v1968_v27 = vpop.f32.mrf.mxu0 }
0x109c   :  { %v1323_v28 = vadd.f32 %v1780_v22, %v1314_v25  ;;  %v1328_v29 = vsel %vm106_vm0, %v1324_v26, 0.0 }
0x109d   :  { %1329 = vadd.xlane.f32.xlu0 %v1328_v29 }
0x109e   :  { %v1325_v30 = vadd.f32 %v1323_v28, %v2471_v53  ;;  %v2040_v53 = vld [vmem:[%s2586_s5 + $0x18] sm:$0xff]   ;;  %v1799_v28 = vld [vmem:[#allocation7 + $0x11] ss:$0 sm:$0xff] }
0x109f   :  { %1976 = vmatpush3.bf16.msra.mxu0 %v2040_v53 }
0x10a0   :  { %v1331_v33 = vsel %vm106_vm0, %v1325_v30, 0.0  ;;  %1977 = vmatprep.subr.bf16.mxu0 %v2251_v15 }
0x10a1   :  { %1332 = vadd.xlane.f32.xlu1 %v1331_v33 }
0x10a3   :  { %1978 = vmatpush3.bf16.msra.mxu0 %v2041_v41 }
0x10a4   :  { %1995 = vmatprep.subr.bf16.mxu0 %v2251_v15 }
0x1126   :  { %v1330_v34 = vpop.xlane.xlu0 %1329 }
0x1127   :  { %v1334_v35 = vmul.f32 0.03125, %v1330_v34 }
0x1129   :  { %v1336_v52 = vsub.f32 %v1324_v26, %v1334_v35 }
0x112a   :  { %v1333_v36 = vpop.xlane.xlu1 %1332 }
0x112b   :  { %v1335_v37 = vmul.f32 0.03125, %v1333_v36  ;;  %v1338_v38 = vmul.f32 %v1336_v52, %v1336_v52 }
0x112d   :  { %v1337_v57 = vsub.f32 %v1325_v30, %v1335_v37  ;;  %v1340_v39 = vsel %vm106_vm0, %v1338_v38, 0.0 }
0x112e   :  { %1341 = vadd.xlane.f32.xlu1 %v1340_v39 }
0x112f   :  { %v1339_v51 = vmul.f32 %v1337_v57, %v1337_v57 }
0x1131   :  { %v1343_v40 = vsel %vm106_vm0, %v1339_v51, 0.0 }
0x1132   :  { %1344 = vadd.xlane.f32.xlu1 %v1343_v40 }
0x11b7   :  { %v1342_v42 = vpop.xlane.xlu1 %1341 }
0x11b8   :  { %v1346_v43 = vmul.f32 0.03125, %v1342_v42 }
0x11ba   :  { %v1348_v44 = vadd.f32 1e-12, %v1346_v43 }
0x11bb   :  { %v1345_v45 = vpop.xlane.xlu1 %1344 }
0x11bc   :  { %2098 = vrsqrt.f32 %v1348_v44  ;;  %v1347_v46 = vmul.f32 0.03125, %v1345_v45 }
0x11be   :  { %v1349_v47 = vadd.f32 1e-12, %v1347_v46 }
0x11c0   :  { %2100 = vrsqrt.f32 %v1349_v47  ;;  %v2046_v47 = vld [vmem:[#allocation8 + $0x8] sm:$0xff]  }
0x11c9   :  { %v2099_v48 = vpop.eup %2098 }
0x11ca   :  { %v1352_v49 = vmul.f32 %v2099_v48, %v1336_v52  ;;  %v2047_v48 = vld [vmem:[#allocation8] sm:$0xff]  }
0x11cc   :  { %v1358_v56 = vmul.f32 %v1781_v50, %v1352_v49 }
0x11cd   :  { %v2101_v54 = vpop.eup %2100 }
0x11ce   :  { %v1353_v55 = vmul.f32 %v2101_v54, %v1337_v57  ;;  %v1364_v60 = vadd.f32 %v1782_v58, %v1358_v56 }
0x11d0   :  { %v1359_v59 = vmul.f32 %v1781_v50, %v1353_v55 }
0x11d2   :  { %v1365_v61 = vadd.f32 %v1782_v58, %v1359_v59 }
0x11d4   :  { %v1366_v62 = vpack.c.bf16 %v1365_v61, %v1364_v60 }
0x11d6   :  { %1980 = vmatmul.mubr.msk.bf16.vlgmr.msra.gmra.mxu0 %vm106_vm0, %v1366_v62 }
0x11d7   :  { %1999 = vmatprep.mubr.msk.bf16.mxu0 %vm2252_vm1, %v2251_v15  ;;  %1996 = vmatpush3.bf16.msra.mxu0 %v2046_v47 }
0x11d8   :  { %1997 = vmatprep.subr.bf16.mxu0 %v2251_v15 }
0x11db   :  { %1998 = vmatpush3.bf16.msra.mxu0 %v2047_v48 }
0x11dc   :  { %2003 = vmatprep.subr.bf16.mxu0 %v2251_v15 }
0x1296   :  { %v1426_v4 = vpop.f32.mrf.mxu0 }
0x1297   :  { %v1427_v5 = vadd.f32 %v1787_v3, %v1426_v4 }
0x1298   :  { %v1981_v6 = vpop.f32.mrf.mxu0 }
0x1299   :  { %v1433_v7 = vmul.f32 %v1427_v5, %v1427_v5  ;;  %v2048_v6 = vld [vmem:[#allocation10 + $0x8] sm:$0xff]  }
0x129a   :  { %v1429_v8 = vpop.f32.mrf.mxu0 }
0x129b   :  { %v1435_v9 = vmul.f32 %v1433_v7, %v1427_v5  ;;  %v1430_v10 = vadd.f32 %v1787_v3, %v1429_v8  ;;  %v2049_v7 = vld [vmem:[#allocation10] sm:$0xff]   ;;  %v1807_v8 = vld [vmem:[#allocation7 + $0x2] ss:$0 sm:$0xff] }
0x129c   :  { %v1982_v11 = vpop.f32.mrf.mxu0 }
0x129d   :  { %v1437_v12 = vmul.f32 0.044715, %v1435_v9  ;;  %v1434_v13 = vmul.f32 %v1430_v10, %v1430_v10 }
0x129f   :  { %v1439_v14 = vadd.f32 %v1437_v12, %v1427_v5  ;;  %v1436_v16 = vmul.f32 %v1434_v13, %v1430_v10 }
0x12a1   :  { %v1441_v17 = vmul.f32 0.7978846, %v1439_v14  ;;  %v1438_v18 = vmul.f32 0.044715, %v1436_v16 }
0x12a3   :  { %2102 = vtanh.f32 %v1441_v17  ;;  %v1440_v19 = vadd.f32 %v1438_v18, %v1430_v10 }
0x12a5   :  { %v1442_v20 = vmul.f32 0.7978846, %v1440_v19  ;;  %v1811_v19 = vld [vmem:[#allocation7 + $0x3] ss:$0 sm:$0xff] }
0x12a7   :  { %2104 = vtanh.f32 %v1442_v20 }
0x12b0   :  { %v2103_v21 = vpop.eup %2102 }
0x12b1   :  { %v1445_v22 = vadd.f32 1.0, %v2103_v21 }
0x12b3   :  { %v1447_v31 = vmul.f32 0.5, %v1445_v22 }
0x12b4   :  { %v2105_v23 = vpop.eup %2104 }
0x12b5   :  { %v1446_v24 = vadd.f32 1.0, %v2105_v23  ;;  %v1449_v25 = vmul.f32 %v1447_v31, %v1427_v5 }
0x12b7   :  { %v1448_v32 = vmul.f32 0.5, %v1446_v24 }
0x12b9   :  { %v1450_v26 = vmul.f32 %v1448_v32, %v1430_v10 }
0x12bb   :  { %v1451_v27 = vpack.c.bf16 %v1450_v26, %v1449_v25 }
0x12bd   :  { %1992 = vmatmul.mubr.msk.bf16.vlgmr.msra.gmra.mxu1 %vm774_vm3, %v1451_v27 }
0x137d   :  { %v1527_v29 = vpop.f32.mrf.mxu1 }
0x137e   :  { %v1528_v30 = vadd.f32 %v1799_v28, %v1527_v29 }
0x137f   :  { %v1993_v33 = vpop.f32.mrf.mxu1 }
0x1380   :  { %v1534_v34 = vadd.f32 %v1528_v30, %v1364_v60 }
0x1381   :  { %v1530_v35 = vpop.f32.mrf.mxu1 }
0x1382   :  { %v1531_v52 = vadd.f32 %v1799_v28, %v1530_v35  ;;  %v1538_v36 = vsel %vm106_vm0, %v1534_v34, 0.0 }
0x1383   :  { %1539 = vadd.xlane.f32.xlu1 %v1538_v36  ;;  %v1994_v37 = vpop.f32.mrf.mxu1 }
0x1384   :  { %v1535_v38 = vadd.f32 %v1531_v52, %v1365_v61  ;;  %v1805_v61 = vld [vmem:[#allocation7 + $0x12] ss:$0 sm:$0xff] }
0x1386   :  { %v1541_v57 = vsel %vm106_vm0, %v1535_v38, 0.0 }
0x1387   :  { %1542 = vadd.xlane.f32.xlu1 %v1541_v57 }
0x140c   :  { %v1540_v39 = vpop.xlane.xlu1 %1539 }
0x140d   :  { %v1544_v51 = vmul.f32 0.03125, %v1540_v39 }
0x140f   :  { %v1546_v40 = vsub.f32 %v1534_v34, %v1544_v51 }
0x1410   :  { %v1543_v53 = vpop.xlane.xlu1 %1542 }
0x1411   :  { %v1545_v41 = vmul.f32 0.03125, %v1543_v53  ;;  %v1548_v42 = vmul.f32 %v1546_v40, %v1546_v40 }
0x1413   :  { %v1547_v43 = vsub.f32 %v1535_v38, %v1545_v41  ;;  %v1550_v44 = vsel %vm106_vm0, %v1548_v42, 0.0 }
0x1414   :  { %1551 = vadd.xlane.f32.xlu1 %v1550_v44 }
0x1415   :  { %v1549_v45 = vmul.f32 %v1547_v43, %v1547_v43 }
0x1417   :  { %v1553_v46 = vsel %vm106_vm0, %v1549_v45, 0.0 }
0x1418   :  { %1554 = vadd.xlane.f32.xlu0 %v1553_v46 }
0x149d   :  { %v1552_v49 = vpop.xlane.xlu1 %1551 }
0x149e   :  { %v1556_v50 = vmul.f32 0.03125, %v1552_v49 }
0x14a0   :  { %v1558_v54 = vadd.f32 1e-12, %v1556_v50 }
0x14a1   :  { %v1555_v55 = vpop.xlane.xlu0 %1554 }
0x14a2   :  { %2106 = vrsqrt.f32 %v1558_v54  ;;  %v1557_v56 = vmul.f32 0.03125, %v1555_v55 }
0x14a4   :  { %v1559_v58 = vadd.f32 1e-12, %v1557_v56 }
0x14a6   :  { %2108 = vrsqrt.f32 %v1559_v58 }
0x14af   :  { %v2107_v59 = vpop.eup %2106 }
0x14b0   :  { %v1562_v60 = vmul.f32 %v2107_v59, %v1546_v40 }
0x14b2   :  { %v1568_v0 = vmul.f32 %v1805_v61, %v1562_v60 }
0x14b3   :  { %v2109_v62 = vpop.eup %2108 }
0x14b4   :  { %v1563_v63 = vmul.f32 %v2109_v62, %v1547_v43  ;;  %v1574_v3 = vadd.f32 %v1806_v1, %v1568_v0 }
0x14b6   :  { %v1569_v2 = vmul.f32 %v1805_v61, %v1563_v63 }
0x14b8   :  { %v1575_v4 = vadd.f32 %v1806_v1, %v1569_v2 }
0x14ba   :  { %v1576_v5 = vpack.c.bf16 %v1575_v4, %v1574_v3 }
0x14bc   :  { %2000 = vmatmul.mubr.msk.bf16.vlgmr.msra.gmra.mxu0 %vm106_vm0, %v1576_v5 }
0x14bd   :  { %2007 = vmatprep.mubr.msk.bf16.mxu0 %vm2252_vm1, %v2251_v15  ;;  %2004 = vmatpush3.bf16.msra.mxu0 %v2048_v6 }
0x14be   :  { %2005 = vmatprep.subr.bf16.mxu0 %v2251_v15 }
0x14c1   :  { %2006 = vmatpush3.bf16.msra.mxu0 %v2049_v7 }
0x157c   :  { %v1635_v9 = vpop.f32.mrf.mxu0 }
0x157d   :  { %v1636_v10 = vadd.f32 %v1807_v8, %v1635_v9 }
0x157e   :  { %v2001_v11 = vpop.f32.mrf.mxu0 }
0x157f   :  { %2110 = vtanh.f32 %v1636_v10 }
0x1580   :  { %v1638_v12 = vpop.f32.mrf.mxu0 }
0x1581   :  { %v1639_v13 = vadd.f32 %v1807_v8, %v1638_v12 }
0x1582   :  { %v2002_v14 = vpop.f32.mrf.mxu0 }
0x1583   :  { %2112 = vtanh.f32 %v1639_v13 }
0x158c   :  { %v2111_v16 = vpop.eup %2110 }
0x1590   :  { %v2113_v17 = vpop.eup %2112 }
0x1591   :  { %v1644_v18 = vpack.c.bf16 %v2113_v17, %v2111_v16 }
0x1593   :  { %2008 = vmatmul.mubr.msk.bf16.vlgmr.msra.gmra.mxu0 %vm106_vm0, %v1644_v18 }
0x1653   :  { %v1703_v20 = vpop.f32.mrf.mxu0 }
0x1654   :  { %v1704_v21 = vadd.f32 %v1811_v19, %v1703_v20 }
0x1655   :  { %v2009_v22 = vpop.f32.mrf.mxu0 }
0x1656   :  { %1710 = vst [vmem:[#allocation11] sm:$0xff] %v1704_v21 }
0x1657   :  { %v1706_v15 = vpop.f32.mrf.mxu0 }
0x1658   :  { %v1707_v23 = vadd.f32 %v1811_v19, %v1706_v15 }
0x1659   :  { %v2010_v31 = vpop.f32.mrf.mxu0 }
0x165a   :  { %1711 = vst [vmem:[#allocation11 + $0x8] sm:$0xff] %v1707_v23 }
0x165b   :  { %2225 = shalt.err (!%p2222_p1)
}
0x165c   :  { %1723 = dma.vmem_to_hbm [thread:$0]  %s1718_s29, 256, %s2590_s9, [#allocation4], %s2244_s14, %s2244_s14, %s2245_s15  }
0x165d   :  { %2240 = dma.done.wait [#allocation4], 256  }
0x165e   :  { %2241 = vsyncadd [#allocation4], 4294967040 }
0x165f   :  { %1727 = vsyncpa [#allocation3], 1 }
0x1660   :  { %1728 = vsyncpa [#allocation6], 1 }
0x1661   :  { %1729 = vsyncpa [#allocation9], 1 }
0x1662   :  { %1730 = vsyncpa [#allocation4], 1 }

</bundles_post_ra>
